<compile_context>
chip_gen: v6e
topology: v6e:2x2x1
jax: 0.10.0
libtpu: 0.0.40
codegen_flags: <defaults>
</compile_context>

<pallas_src>
import functools
import math

import jax
import jax.numpy as jnp
from jax import lax
from jax.experimental import pallas as pl
from jax.experimental.pallas import tpu as pltpu


def _round_up(a, m):
    return (a + m - 1) // m * m


def _erf(x):
    # Abramowitz & Stegun 7.1.26 (|err| < 1.5e-7): mul/add/exp/rcp only, lowers on VPU/EUP.
    # The divide uses the EUP approximate reciprocal (covered by the test tolerances;
    # switch approx=False for bit-closer fidelity).
    a1, a2, a3, a4, a5 = (0.254829592, -0.284496736, 1.421413741,
                          -1.453152027, 1.061405429)
    p = 0.3275911
    sgn = jnp.where(x >= 0.0, 1.0, -1.0)
    ax = jnp.abs(x)
    t = pl.reciprocal(1.0 + p * ax, approx=True)
    poly = ((((a5 * t + a4) * t + a3) * t + a2) * t + a1) * t
    return sgn * (1.0 - poly * jnp.exp(-ax * ax))


def _gelu_exact(x):
    # matches nn.GELU() default (approximate='none'): 0.5*x*(1+erf(x/sqrt(2)))
    return 0.5 * x * (1.0 + _erf(x * 0.7071067811865476))


def _mixffn_kernel(x_ref, w1_ref, b1_ref, wdw_ref, bdw_ref, w2_ref, b2_ref,
                   o_ref, h_scr, *, W, HW, R, HT, GPAD, has_depth):
    rows, Cp = x_ref.shape
    sdtype = h_scr.dtype

    # Scratch-level halo bands (only read by discarded non-spatial conv rows).  Re-zeroed
    # every step: it is a handful of rows, and it stays correct when the 'parallel' grid
    # axis is sharded across TensorCores (each core owns a separate scratch copy).
    zero_band = jnp.zeros((GPAD, Cp), sdtype)
    h_scr[0:GPAD, :] = zero_band
    h_scr[GPAD + rows:GPAD + rows + GPAD, :] = zero_band

    # Row-classification masks, computed once per grid step on (rows, 1) columns.
    rel = lax.broadcasted_iota(jnp.int32, (rows, 1), 0) % R
    is_spatial = (rel >= HT) & (rel < HT + HW)
    keep = (is_spatial | (rel == R - 1)) if has_depth else is_spatial
    col = (rel - HT) % W
    mleft = (col >= 1).astype(sdtype)        # dx == -1 tap valid
    mright = (col <= W - 2).astype(sdtype)   # dx == +1 tap valid

    # ---- fc1: one matmul over the whole slab; zero every non-token row so the per-image
    # halo rows are clean zero padding for the conv taps. ----
    h = jnp.dot(x_ref[...], w1_ref[...],
                preferred_element_type=jnp.float32) + b1_ref[...]
    h_scr[GPAD:GPAD + rows, :] = jnp.where(keep, h, 0.0).astype(sdtype)

    # ---- 3x3 depthwise conv (stride 1, pad 1): 9 shifted whole-slab reads.  The dy (row)
    # padding comes from the per-image zero halos; only the dx (column) mask is applied.
    # Weights are loaded once; each weight row is broadcast once per tap. ----
    wdw = wdw_ref[...]
    center = h_scr[GPAD:GPAD + rows, :]
    acc = center * wdw[4:5, :]               # (dy, dx) == (0, 0) tap seeds the accumulator
    for dy in (-1, 0, 1):
        for dx in (-1, 0, 1):
            if dy == 0 and dx == 0:
                continue
            start = GPAD + dy * W + dx
            tap = h_scr[start:start + rows, :]
            if dx == -1:
                tap = tap * mleft
            elif dx == 1:
                tap = tap * mright
            k = (dy + 1) * 3 + (dx + 1)
            acc = acc + tap * wdw[k:k + 1, :]
    conv = acc + bdw_ref[...]

    # Spatial rows take the conv result; the depth-token row keeps its fc1 output; halo/pad
    # rows stay zero.  One select over the slab, then GELU + fc2 and one unmasked store.
    merged = jnp.where(is_spatial, conv, center)
    a = _gelu_exact(merged.astype(jnp.float32))
    y = jnp.dot(a.astype(w2_ref.dtype), w2_ref[...],
                preferred_element_type=jnp.float32) + b2_ref[...]
    o_ref[...] = y.astype(o_ref.dtype)


def mixffn_forward(x, params, H, W, *, compute_dtype=None, batch_tile=None):
    """Fused MixFFN forward (fc1 -> 3x3 depthwise conv -> GELU -> fc2).

    compute_dtype: optional dtype (e.g. jnp.bfloat16) for the matmul operands and the conv
    scratch (recommended on v6e/v7x; keep the default f32 on v5e).  Dots accumulate in f32.
    """
    B, N, C = x.shape
    HW = H * W
    assert N in (HW, HW + 1), "N must be H*W or H*W + 1 (depth token)"
    has_depth = (N == HW + 1)
    w1, b1, wdw, bdw, w2, b2 = params

    mm_dtype = jnp.dtype(compute_dtype) if compute_dtype is not None else jnp.dtype(x.dtype)
    sdtype = jnp.bfloat16 if mm_dtype == jnp.bfloat16 else jnp.float32

    Cp = _round_up(C, 128)                                   # lane-dense channel axis
    HT = _round_up(W + 1, 8)                                 # per-image top halo (>= W+1)
    TAIL = _round_up((W + 2) if has_depth else (W + 1), 8)   # zero tail (+ depth token last)
    R = HT + HW + TAIL                                       # per-image row stride (mult of 8)
    GPAD = _round_up(W + 1, 8)                               # scratch halo for slab edges

    # Per-chip VMEM budget (v7x has only 64 MiB per TensorCore).
    try:
        vmem_cap = int(pltpu.get_tpu_info().vmem_capacity_bytes)
    except Exception:  # conservative fallback, safe on every generation
        vmem_cap = 64 << 20
    budget = vmem_cap * 3 // 4

    mm_b = mm_dtype.itemsize
    out_b = jnp.dtype(x.dtype).itemsize
    s_b = jnp.dtype(sdtype).itemsize
    weight_bytes = 2 * (2 * Cp * Cp * mm_b) + 16 * Cp * 8    # double-buffered w1/w2 + small ops

    def step_bytes(bt):
        rows = bt * R
        io = 2 * rows * Cp * (mm_b + out_b)                  # double-buffered in + out blocks
        scr = (rows + 2 * GPAD) * Cp * s_b                   # fc1/conv scratch
        tmp = 4 * rows * Cp * 4                              # headroom for compiler temporaries
        return io + scr + tmp + weight_bytes

    # Batch folding: several images per grid step -> large-M matmuls, fewer grid steps.
    if batch_tile is None:
        max_bt = B if B == 1 else max(1, (B + 1) // 2)       # keep grid >= 2 (v7x: 2 TCs/chip)
        Bt = 1
        for cand in range(1, max_bt + 1):
            if step_bytes(cand) <= budget and cand * R * Cp * (mm_b + out_b) <= (16 << 20):
                Bt = cand
    else:
        Bt = max(1, int(batch_tile))
    Bp = _round_up(B, Bt)                                    # pad batch: no B % Bt requirement
    grid = (Bp // Bt,)

    # Pack inputs into the per-image halo'd row layout (all extra rows are zero).
    xp = jnp.zeros((Bp, R, Cp), mm_dtype)
    xp = xp.at[:B, HT:HT + HW, :C].set(x[:, :HW, :].astype(mm_dtype))
    if has_depth:
        xp = xp.at[:B, R - 1, :C].set(x[:, HW, :].astype(mm_dtype))
    x2d = xp.reshape(Bp * R, Cp)

    # Weights stored (in, out) so the kernel computes x @ W (== PyTorch x @ W_pt.T).
    w1p = jnp.pad(w1, ((0, Cp - C), (0, Cp - C))).astype(mm_dtype)
    w2p = jnp.pad(w2, ((0, Cp - C), (0, Cp - C))).astype(mm_dtype)
    b1p = jnp.pad(b1, ((0, 0), (0, Cp - C))).astype(jnp.float32)
    b2p = jnp.pad(b2, ((0, 0), (0, Cp - C))).astype(jnp.float32)
    wdwp = jnp.pad(wdw, ((0, 0), (0, Cp - C))).astype(sdtype)
    bdwp = jnp.pad(bdw, ((0, 0), (0, Cp - C))).astype(sdtype)

    vmem_limit = int(min(vmem_cap * 9 // 10, max(32 << 20, step_bytes(Bt) + (8 << 20))))

    cost = pl.CostEstimate(
        flops=int(2 * 2 * Bp * R * Cp * Cp + 2 * Bp * HW * Cp * 9),
        transcendentals=int(Bp * R * Cp),
        bytes_accessed=int(Bp * R * Cp * (mm_b + out_b) + 2 * Cp * Cp * mm_b + 16 * Cp * 8),
    )

    kernel = functools.partial(_mixffn_kernel, W=W, HW=HW, R=R, HT=HT, GPAD=GPAD,
                               has_depth=has_depth)

    grid_spec = pltpu.PrefetchScalarGridSpec(
        num_scalar_prefetch=0,
        grid=grid,
        in_specs=[
            pl.BlockSpec((Bt * R, Cp), lambda i: (i, 0)),    # x slab (tokens-major 2-D)
            pl.BlockSpec((Cp, Cp), lambda i: (0, 0)),        # fc1 weight (in, out)
            pl.BlockSpec((1, Cp), lambda i: (0, 0)),         # fc1 bias
            pl.BlockSpec((9, Cp), lambda i: (0, 0)),         # dwconv weight (kh*kw, C)
            pl.BlockSpec((1, Cp), lambda i: (0, 0)),         # dwconv bias
            pl.BlockSpec((Cp, Cp), lambda i: (0, 0)),        # fc2 weight (in, out)
            pl.BlockSpec((1, Cp), lambda i: (0, 0)),         # fc2 bias
        ],
        out_specs=pl.BlockSpec((Bt * R, Cp), lambda i: (i, 0)),
        scratch_shapes=[pltpu.VMEM((2 * GPAD + Bt * R, Cp), sdtype)],
    )

    out2d = pl.pallas_call(
        kernel,
        out_shape=jax.ShapeDtypeStruct((Bp * R, Cp), x.dtype),
        grid_spec=grid_spec,
        compiler_params=pltpu.CompilerParams(
            dimension_semantics=("parallel",),
            vmem_limit_bytes=vmem_limit),
        cost_estimate=cost,
    )(x2d, w1p, b1p, wdwp, bdwp, w2p, b2p)

    out = out2d.reshape(Bp, R, Cp)
    spatial = out[:B, HT:HT + HW, :C]
    if has_depth:
        return jnp.concatenate([spatial, out[:B, R - 1:R, :C]], axis=1)
    return spatial


def init_params(key, C):
    """Deterministic synthetic init mirroring MixFFN._init_weights shapes.

    NOTE: real PyTorch depthwise weights (C,1,3,3) must be permuted to (3,3,C) -> (9,C).
    """
    k1, k2, k3 = jax.random.split(key, 3)
    # Linear layers: trunc_normal(std=0.02), bias 0.  Stored (in, out) for x @ W.
    w1 = 0.02 * jax.random.truncated_normal(k1, -2.0, 2.0, (C, C), jnp.float32)
    b1 = jnp.zeros((1, C), jnp.float32)
    # Depthwise conv: normal(0, sqrt(2/fan_out)), fan_out = 3*3*C // groups(C) = 9; bias 0.
    std = math.sqrt(2.0 / 9.0)
    wdw = (std * jax.random.normal(k2, (3, 3, C), jnp.float32)).reshape(9, C)
    bdw = jnp.zeros((1, C), jnp.float32)
    w2 = 0.02 * jax.random.truncated_normal(k3, -2.0, 2.0, (C, C), jnp.float32)
    b2 = jnp.zeros((1, C), jnp.float32)
    return w1, b1, wdw, bdw, w2, b2


def mixffn_reference(x, params, H, W):
    """Pure-JAX reference of the PyTorch forward (for correctness checking)."""
    w1, b1, wdw9, bdw, w2, b2 = params
    B, N, C = x.shape
    HW = H * W
    h = x @ w1 + b1
    hs = h[:, :HW, :].reshape(B, H, W, C)
    kernel = wdw9.reshape(3, 3, 1, C)                        # HWIO, depthwise
    conv = lax.conv_general_dilated(
        hs, kernel, window_strides=(1, 1), padding="SAME",
        dimension_numbers=("NHWC", "HWIO", "NHWC"),
        feature_group_count=C) + bdw.reshape(1, 1, 1, C)
    conv = conv.reshape(B, HW, C)
    full = jnp.concatenate([conv, h[:, HW:, :]], axis=1) if N == HW + 1 else conv
    a = jax.nn.gelu(full, approximate=False)
    return a @ w2 + b2


if __name__ == "__main__":
    key = jax.random.PRNGKey(0)
    B, C, H, W = 2, 32, 8, 8
    N = H * W + 1                      # spatial tokens + depth token branch of DWConv
    kx, kp = jax.random.split(key)
    x = jax.random.normal(kx, (B, N, C), jnp.float32)
    params = init_params(kp, C)

    ref = mixffn_reference(x, params, H, W)

    # f32 path (exact PyTorch semantics; tolerance covers the A&S erf polynomial and the
    # EUP approximate reciprocal inside erf).
    out = jax.block_until_ready(mixffn_forward(x, params, H, W))
    assert out.shape == (B, N, C)
    max_err = float(jnp.max(jnp.abs(out - ref)))
    assert jnp.allclose(out, ref, atol=2e-3, rtol=1e-2), f"f32 max_err={max_err}"

    # bf16 MXU path (operands + conv scratch bf16, f32 accumulation) — looser tolerance.
    out_bf16 = jax.block_until_ready(
        mixffn_forward(x, params, H, W, compute_dtype=jnp.bfloat16))
    max_err_bf16 = float(jnp.max(jnp.abs(out_bf16 - ref)))
    assert jnp.allclose(out_bf16, ref, atol=5e-2, rtol=5e-2), f"bf16 max_err={max_err_bf16}"

    print("KERNEL_OK")
</pallas_src>

<mosaic_0001>
module attributes {stable_mosaic.version = 11 : i64} {
  func.func @_mixffn_kernel(%arg0: i32, %arg1: memref<96x128xf32, #tpu.memory_space<vmem>>, %arg2: memref<128x128xf32, #tpu.memory_space<vmem>>, %arg3: memref<1x128xf32, #tpu.memory_space<vmem>>, %arg4: memref<9x128xf32, #tpu.memory_space<vmem>>, %arg5: memref<1x128xf32, #tpu.memory_space<vmem>>, %arg6: memref<128x128xf32, #tpu.memory_space<vmem>>, %arg7: memref<1x128xf32, #tpu.memory_space<vmem>>, %arg8: memref<96x128xf32, #tpu.memory_space<vmem>>, %arg9: memref<128x128xf32, #tpu.memory_space<vmem>>) attributes {dimension_semantics = [#tpu.dimension_semantics<parallel>], iteration_bounds = array<i64: 2>, scalar_prefetch = 0 : i64, scratch_operands = 1 : i64, tpu.core_type = #tpu.core_type<tc>, window_params = [{transform_indices = @transform_0, window_bounds = array<i64: 96, 128>}, {pipeline_mode = #tpu.pipeline_mode<synchronous>, transform_indices = @transform_1, window_bounds = array<i64: 128, 128>}, {pipeline_mode = #tpu.pipeline_mode<synchronous>, transform_indices = @transform_2, window_bounds = array<i64: 1, 128>}, {pipeline_mode = #tpu.pipeline_mode<synchronous>, transform_indices = @transform_3, window_bounds = array<i64: 9, 128>}, {pipeline_mode = #tpu.pipeline_mode<synchronous>, transform_indices = @transform_4, window_bounds = array<i64: 1, 128>}, {pipeline_mode = #tpu.pipeline_mode<synchronous>, transform_indices = @transform_5, window_bounds = array<i64: 128, 128>}, {pipeline_mode = #tpu.pipeline_mode<synchronous>, transform_indices = @transform_6, window_bounds = array<i64: 1, 128>}, {transform_indices = @transform_7, window_bounds = array<i64: 96, 128>}]} {
    %cst = arith.constant 0.000000e+00 : f32
    %0 = vector.broadcast %cst : f32 to vector<16x128xf32>
    %c0 = arith.constant 0 : index
    %c0_0 = arith.constant 0 : index
    %1 = vector.load %arg9[%c0, %c0_0] : memref<128x128xf32, #tpu.memory_space<vmem>>, vector<16x128xf32>
    tpu.vector_store %arg9[%c0, %c0_0], %0 {strides = array<i32>} : memref<128x128xf32, #tpu.memory_space<vmem>>, vector<16x128xf32>,
    %c112 = arith.constant 112 : index
    %c0_1 = arith.constant 0 : index
    %2 = vector.load %arg9[%c112, %c0_1] : memref<128x128xf32, #tpu.memory_space<vmem>>, vector<16x128xf32>
    tpu.vector_store %arg9[%c112, %c0_1], %0 {strides = array<i32>} : memref<128x128xf32, #tpu.memory_space<vmem>>, vector<16x128xf32>,
    %3 = tpu.iota {dimensions = array<i32: 0>} : vector<96x1xi32>
    %c96_i32 = arith.constant 96 : i32
    %c0_i32 = arith.constant 0 : i32
    %4 = arith.cmpi eq, %c96_i32, %c0_i32 : i32
    %c1_i32 = arith.constant 1 : i32
    %5 = arith.select %4, %c1_i32, %c96_i32 : i32
    %6 = vector.broadcast %5 : i32 to vector<96x1xi32>
    %7 = arith.remsi %3, %6 : vector<96x1xi32>
    %c0_i32_2 = arith.constant 0 : i32
    %8 = vector.broadcast %c0_i32_2 : i32 to vector<96x1xi32>
    %9 = arith.cmpi ne, %7, %8 : vector<96x1xi32>
    %c0_i32_3 = arith.constant 0 : i32
    %10 = vector.broadcast %c0_i32_3 : i32 to vector<96x1xi32>
    %11 = arith.cmpi slt, %7, %10 : vector<96x1xi32>
    %c0_i32_4 = arith.constant 0 : i32
    %12 = arith.cmpi slt, %5, %c0_i32_4 : i32
    %13 = vector.broadcast %12 : i1 to vector<96x1xi1>
    %14 = vector.broadcast %13 : vector<96x1xi1> to vector<96x1xi1>
    %15 = arith.xori %11, %14 : vector<96x1xi1>
    %16 = arith.andi %15, %9 : vector<96x1xi1>
    %17 = vector.broadcast %5 : i32 to vector<96x1xi32>
    %18 = arith.addi %7, %17 : vector<96x1xi32>
    %19 = arith.select %16, %18, %7 : vector<96x1xi1>, vector<96x1xi32>
    %c16_i32 = arith.constant 16 : i32
    %20 = vector.broadcast %c16_i32 : i32 to vector<96x1xi32>
    %21 = arith.cmpi sge, %19, %20 : vector<96x1xi32>
    %c80_i32 = arith.constant 80 : i32
    %22 = vector.broadcast %c80_i32 : i32 to vector<96x1xi32>
    %23 = arith.cmpi slt, %19, %22 : vector<96x1xi32>
    %24 = arith.andi %21, %23 : vector<96x1xi1>
    %c95_i32 = arith.constant 95 : i32
    %25 = vector.broadcast %c95_i32 : i32 to vector<96x1xi32>
    %26 = arith.cmpi eq, %19, %25 : vector<96x1xi32>
    %27 = arith.ori %24, %26 : vector<96x1xi1>
    %c16_i32_5 = arith.constant 16 : i32
    %28 = vector.broadcast %c16_i32_5 : i32 to vector<96x1xi32>
    %29 = arith.subi %19, %28 : vector<96x1xi32>
    %c8_i32 = arith.constant 8 : i32
    %c0_i32_6 = arith.constant 0 : i32
    %30 = arith.cmpi eq, %c8_i32, %c0_i32_6 : i32
    %c1_i32_7 = arith.constant 1 : i32
    %31 = arith.select %30, %c1_i32_7, %c8_i32 : i32
    %32 = vector.broadcast %31 : i32 to vector<96x1xi32>
    %33 = arith.remsi %29, %32 : vector<96x1xi32>
    %c0_i32_8 = arith.constant 0 : i32
    %34 = vector.broadcast %c0_i32_8 : i32 to vector<96x1xi32>
    %35 = arith.cmpi ne, %33, %34 : vector<96x1xi32>
    %c0_i32_9 = arith.constant 0 : i32
    %36 = vector.broadcast %c0_i32_9 : i32 to vector<96x1xi32>
    %37 = arith.cmpi slt, %33, %36 : vector<96x1xi32>
    %c0_i32_10 = arith.constant 0 : i32
    %38 = arith.cmpi slt, %31, %c0_i32_10 : i32
    %39 = vector.broadcast %38 : i1 to vector<96x1xi1>
    %40 = vector.broadcast %39 : vector<96x1xi1> to vector<96x1xi1>
    %41 = arith.xori %37, %40 : vector<96x1xi1>
    %42 = arith.andi %41, %35 : vector<96x1xi1>
    %43 = vector.broadcast %31 : i32 to vector<96x1xi32>
    %44 = arith.addi %33, %43 : vector<96x1xi32>
    %45 = arith.select %42, %44, %33 : vector<96x1xi1>, vector<96x1xi32>
    %c1_i32_11 = arith.constant 1 : i32
    %46 = vector.broadcast %c1_i32_11 : i32 to vector<96x1xi32>
    %47 = arith.cmpi sge, %45, %46 : vector<96x1xi32>
    %48 = arith.extui %47 : vector<96x1xi1> to vector<96x1xi32>
    %49 = arith.sitofp %48 : vector<96x1xi32> to vector<96x1xf32>
    %c6_i32 = arith.constant 6 : i32
    %50 = vector.broadcast %c6_i32 : i32 to vector<96x1xi32>
    %51 = arith.cmpi sle, %45, %50 : vector<96x1xi32>
    %52 = arith.extui %51 : vector<96x1xi1> to vector<96x1xi32>
    %53 = arith.sitofp %52 : vector<96x1xi32> to vector<96x1xf32>
    %c0_12 = arith.constant 0 : index
    %c0_13 = arith.constant 0 : index
    %54 = vector.load %arg1[%c0_12, %c0_13] : memref<96x128xf32, #tpu.memory_space<vmem>>, vector<96x128xf32>
    %c0_14 = arith.constant 0 : index
    %c0_15 = arith.constant 0 : index
    %55 = vector.load %arg2[%c0_14, %c0_15] : memref<128x128xf32, #tpu.memory_space<vmem>>, vector<128x128xf32>
    %cst_16 = arith.constant dense<0.000000e+00> : vector<96x128xf32>
    %56 = tpu.matmul %54, %55, %cst_16 {dimension_numbers = #tpu.dot_dimension_numbers<[1], [0], [0], [1], [0, 0, 1, 1], [], []>} : vector<96x128xf32>, vector<128x128xf32>, vector<96x128xf32> -> vector<96x128xf32>
    %c0_17 = arith.constant 0 : index
    %c0_18 = arith.constant 0 : index
    %57 = vector.load %arg3[%c0_17, %c0_18] : memref<1x128xf32, #tpu.memory_space<vmem>>, vector<1x128xf32>
    %58 = vector.broadcast %57 : vector<1x128xf32> to vector<96x128xf32>
    %59 = arith.addf %56, %58 : vector<96x128xf32>
    %cst_19 = arith.constant 0.000000e+00 : f32
    %60 = vector.shape_cast %27 : vector<96x1xi1> to vector<96x1xi1>
    %61 = vector.broadcast %60 : vector<96x1xi1> to vector<96x128xi1>
    %62 = vector.broadcast %cst_19 : f32 to vector<96x128xf32>
    %63 = arith.select %61, %59, %62 : vector<96x128xi1>, vector<96x128xf32>
    %c16 = arith.constant 16 : index
    %c0_20 = arith.constant 0 : index
    %64 = vector.load %arg9[%c16, %c0_20] : memref<128x128xf32, #tpu.memory_space<vmem>>, vector<96x128xf32>
    tpu.vector_store %arg9[%c16, %c0_20], %63 {strides = array<i32>} : memref<128x128xf32, #tpu.memory_space<vmem>>, vector<96x128xf32>,
    %c0_21 = arith.constant 0 : index
    %c0_22 = arith.constant 0 : index
    %65 = vector.load %arg4[%c0_21, %c0_22] : memref<9x128xf32, #tpu.memory_space<vmem>>, vector<9x128xf32>
    %c16_23 = arith.constant 16 : index
    %c0_24 = arith.constant 0 : index
    %66 = vector.load %arg9[%c16_23, %c0_24] : memref<128x128xf32, #tpu.memory_space<vmem>>, vector<96x128xf32>
    %67 = vector.extract_strided_slice %65 {offsets = [4, 0], sizes = [1, 128], strides = [1, 1]} : vector<9x128xf32> to vector<1x128xf32>
    %68 = vector.broadcast %67 : vector<1x128xf32> to vector<96x128xf32>
    %69 = arith.mulf %66, %68 : vector<96x128xf32>
    %c7 = arith.constant 7 : index
    %c0_25 = arith.constant 0 : index
    %70 = vector.load %arg9[%c7, %c0_25] : memref<128x128xf32, #tpu.memory_space<vmem>>, vector<96x128xf32>
    %71 = vector.broadcast %49 : vector<96x1xf32> to vector<96x128xf32>
    %72 = arith.mulf %70, %71 : vector<96x128xf32>
    %73 = vector.extract_strided_slice %65 {offsets = [0, 0], sizes = [1, 128], strides = [1, 1]} : vector<9x128xf32> to vector<1x128xf32>
    %74 = vector.broadcast %73 : vector<1x128xf32> to vector<96x128xf32>
    %75 = arith.mulf %72, %74 : vector<96x128xf32>
    %76 = arith.addf %69, %75 : vector<96x128xf32>
    %c8 = arith.constant 8 : index
    %c0_26 = arith.constant 0 : index
    %77 = vector.load %arg9[%c8, %c0_26] : memref<128x128xf32, #tpu.memory_space<vmem>>, vector<96x128xf32>
    %78 = vector.extract_strided_slice %65 {offsets = [1, 0], sizes = [1, 128], strides = [1, 1]} : vector<9x128xf32> to vector<1x128xf32>
    %79 = vector.broadcast %78 : vector<1x128xf32> to vector<96x128xf32>
    %80 = arith.mulf %77, %79 : vector<96x128xf32>
    %81 = arith.addf %76, %80 : vector<96x128xf32>
    %c9 = arith.constant 9 : index
    %c0_27 = arith.constant 0 : index
    %82 = vector.load %arg9[%c9, %c0_27] : memref<128x128xf32, #tpu.memory_space<vmem>>, vector<96x128xf32>
    %83 = vector.broadcast %53 : vector<96x1xf32> to vector<96x128xf32>
    %84 = arith.mulf %82, %83 : vector<96x128xf32>
    %85 = vector.extract_strided_slice %65 {offsets = [2, 0], sizes = [1, 128], strides = [1, 1]} : vector<9x128xf32> to vector<1x128xf32>
    %86 = vector.broadcast %85 : vector<1x128xf32> to vector<96x128xf32>
    %87 = arith.mulf %84, %86 : vector<96x128xf32>
    %88 = arith.addf %81, %87 : vector<96x128xf32>
    %c15 = arith.constant 15 : index
    %c0_28 = arith.constant 0 : index
    %89 = vector.load %arg9[%c15, %c0_28] : memref<128x128xf32, #tpu.memory_space<vmem>>, vector<96x128xf32>
    %90 = vector.broadcast %49 : vector<96x1xf32> to vector<96x128xf32>
    %91 = arith.mulf %89, %90 : vector<96x128xf32>
    %92 = vector.extract_strided_slice %65 {offsets = [3, 0], sizes = [1, 128], strides = [1, 1]} : vector<9x128xf32> to vector<1x128xf32>
    %93 = vector.broadcast %92 : vector<1x128xf32> to vector<96x128xf32>
    %94 = arith.mulf %91, %93 : vector<96x128xf32>
    %95 = arith.addf %88, %94 : vector<96x128xf32>
    %c17 = arith.constant 17 : index
    %c0_29 = arith.constant 0 : index
    %96 = vector.load %arg9[%c17, %c0_29] : memref<128x128xf32, #tpu.memory_space<vmem>>, vector<96x128xf32>
    %97 = vector.broadcast %53 : vector<96x1xf32> to vector<96x128xf32>
    %98 = arith.mulf %96, %97 : vector<96x128xf32>
    %99 = vector.extract_strided_slice %65 {offsets = [5, 0], sizes = [1, 128], strides = [1, 1]} : vector<9x128xf32> to vector<1x128xf32>
    %100 = vector.broadcast %99 : vector<1x128xf32> to vector<96x128xf32>
    %101 = arith.mulf %98, %100 : vector<96x128xf32>
    %102 = arith.addf %95, %101 : vector<96x128xf32>
    %c23 = arith.constant 23 : index
    %c0_30 = arith.constant 0 : index
    %103 = vector.load %arg9[%c23, %c0_30] : memref<128x128xf32, #tpu.memory_space<vmem>>, vector<96x128xf32>
    %104 = vector.broadcast %49 : vector<96x1xf32> to vector<96x128xf32>
    %105 = arith.mulf %103, %104 : vector<96x128xf32>
    %106 = vector.extract_strided_slice %65 {offsets = [6, 0], sizes = [1, 128], strides = [1, 1]} : vector<9x128xf32> to vector<1x128xf32>
    %107 = vector.broadcast %106 : vector<1x128xf32> to vector<96x128xf32>
    %108 = arith.mulf %105, %107 : vector<96x128xf32>
    %109 = arith.addf %102, %108 : vector<96x128xf32>
    %c24 = arith.constant 24 : index
    %c0_31 = arith.constant 0 : index
    %110 = vector.load %arg9[%c24, %c0_31] : memref<128x128xf32, #tpu.memory_space<vmem>>, vector<96x128xf32>
    %111 = vector.extract_strided_slice %65 {offsets = [7, 0], sizes = [1, 128], strides = [1, 1]} : vector<9x128xf32> to vector<1x128xf32>
    %112 = vector.broadcast %111 : vector<1x128xf32> to vector<96x128xf32>
    %113 = arith.mulf %110, %112 : vector<96x128xf32>
    %114 = arith.addf %109, %113 : vector<96x128xf32>
    %c25 = arith.constant 25 : index
    %c0_32 = arith.constant 0 : index
    %115 = vector.load %arg9[%c25, %c0_32] : memref<128x128xf32, #tpu.memory_space<vmem>>, vector<96x128xf32>
    %116 = vector.broadcast %53 : vector<96x1xf32> to vector<96x128xf32>
    %117 = arith.mulf %115, %116 : vector<96x128xf32>
    %118 = vector.extract_strided_slice %65 {offsets = [8, 0], sizes = [1, 128], strides = [1, 1]} : vector<9x128xf32> to vector<1x128xf32>
    %119 = vector.broadcast %118 : vector<1x128xf32> to vector<96x128xf32>
    %120 = arith.mulf %117, %119 : vector<96x128xf32>
    %121 = arith.addf %114, %120 : vector<96x128xf32>
    %c0_33 = arith.constant 0 : index
    %c0_34 = arith.constant 0 : index
    %122 = vector.load %arg5[%c0_33, %c0_34] : memref<1x128xf32, #tpu.memory_space<vmem>>, vector<1x128xf32>
    %123 = vector.broadcast %122 : vector<1x128xf32> to vector<96x128xf32>
    %124 = arith.addf %121, %123 : vector<96x128xf32>
    %125 = vector.shape_cast %24 : vector<96x1xi1> to vector<96x1xi1>
    %126 = vector.broadcast %125 : vector<96x1xi1> to vector<96x128xi1>
    %127 = arith.select %126, %124, %66 : vector<96x128xi1>, vector<96x128xf32>
    %cst_35 = arith.constant 5.000000e-01 : f32
    %128 = vector.broadcast %cst_35 : f32 to vector<96x128xf32>
    %129 = arith.mulf %128, %127 : vector<96x128xf32>
    %cst_36 = arith.constant 0.707106769 : f32
    %130 = vector.broadcast %cst_36 : f32 to vector<96x128xf32>
    %131 = arith.mulf %127, %130 : vector<96x128xf32>
    %cst_37 = arith.constant 0.000000e+00 : f32
    %132 = vector.broadcast %cst_37 : f32 to vector<96x128xf32>
    %133 = arith.cmpf oge, %131, %132 : vector<96x128xf32>
    %cst_38 = arith.constant 1.000000e+00 : f32
    %cst_39 = arith.constant -1.000000e+00 : f32
    %134 = vector.broadcast %cst_38 : f32 to vector<96x128xf32>
    %135 = vector.broadcast %cst_39 : f32 to vector<96x128xf32>
    %136 = arith.select %133, %134, %135 : vector<96x128xi1>, vector<96x128xf32>
    %137 = math.absf %131 : vector<96x128xf32>
    %cst_40 = arith.constant 0.327591091 : f32
    %138 = vector.broadcast %cst_40 : f32 to vector<96x128xf32>
    %139 = arith.mulf %138, %137 : vector<96x128xf32>
    %cst_41 = arith.constant 1.000000e+00 : f32
    %140 = vector.broadcast %cst_41 : f32 to vector<96x128xf32>
    %141 = arith.addf %140, %139 : vector<96x128xf32>
    %142 = tpu.reciprocal %141 {approx = true} : vector<96x128xf32> -> vector<96x128xf32>
    %cst_42 = arith.constant 1.06140542 : f32
    %143 = vector.broadcast %cst_42 : f32 to vector<96x128xf32>
    %144 = arith.mulf %143, %142 : vector<96x128xf32>
    %cst_43 = arith.constant -1.45315206 : f32
    %145 = vector.broadcast %cst_43 : f32 to vector<96x128xf32>
    %146 = arith.addf %144, %145 : vector<96x128xf32>
    %147 = arith.mulf %146, %142 : vector<96x128xf32>
    %cst_44 = arith.constant 1.42141378 : f32
    %148 = vector.broadcast %cst_44 : f32 to vector<96x128xf32>
    %149 = arith.addf %147, %148 : vector<96x128xf32>
    %150 = arith.mulf %149, %142 : vector<96x128xf32>
    %cst_45 = arith.constant -0.284496725 : f32
    %151 = vector.broadcast %cst_45 : f32 to vector<96x128xf32>
    %152 = arith.addf %150, %151 : vector<96x128xf32>
    %153 = arith.mulf %152, %142 : vector<96x128xf32>
    %cst_46 = arith.constant 0.254829586 : f32
    %154 = vector.broadcast %cst_46 : f32 to vector<96x128xf32>
    %155 = arith.addf %153, %154 : vector<96x128xf32>
    %156 = arith.mulf %155, %142 : vector<96x128xf32>
    %cst_47 = arith.constant 0.000000e+00 : f32
    %157 = vector.broadcast %cst_47 : f32 to vector<96x128xf32>
    %158 = arith.subf %157, %137 : vector<96x128xf32>
    %159 = arith.mulf %158, %137 : vector<96x128xf32>
    %160 = math.exp %159 : vector<96x128xf32>
    %161 = arith.mulf %156, %160 : vector<96x128xf32>
    %cst_48 = arith.constant 1.000000e+00 : f32
    %162 = vector.broadcast %cst_48 : f32 to vector<96x128xf32>
    %163 = arith.subf %162, %161 : vector<96x128xf32>
    %164 = arith.mulf %136, %163 : vector<96x128xf32>
    %cst_49 = arith.constant 1.000000e+00 : f32
    %165 = vector.broadcast %cst_49 : f32 to vector<96x128xf32>
    %166 = arith.addf %165, %164 : vector<96x128xf32>
    %167 = arith.mulf %129, %166 : vector<96x128xf32>
    %c0_50 = arith.constant 0 : index
    %c0_51 = arith.constant 0 : index
    %168 = vector.load %arg6[%c0_50, %c0_51] : memref<128x128xf32, #tpu.memory_space<vmem>>, vector<128x128xf32>
    %cst_52 = arith.constant dense<0.000000e+00> : vector<96x128xf32>
    %169 = tpu.matmul %167, %168, %cst_52 {dimension_numbers = #tpu.dot_dimension_numbers<[1], [0], [0], [1], [0, 0, 1, 1], [], []>} : vector<96x128xf32>, vector<128x128xf32>, vector<96x128xf32> -> vector<96x128xf32>
    %c0_53 = arith.constant 0 : index
    %c0_54 = arith.constant 0 : index
    %170 = vector.load %arg7[%c0_53, %c0_54] : memref<1x128xf32, #tpu.memory_space<vmem>>, vector<1x128xf32>
    %171 = vector.broadcast %170 : vector<1x128xf32> to vector<96x128xf32>
    %172 = arith.addf %169, %171 : vector<96x128xf32>
    %c0_55 = arith.constant 0 : index
    %c0_56 = arith.constant 0 : index
    %173 = vector.load %arg8[%c0_55, %c0_56] : memref<96x128xf32, #tpu.memory_space<vmem>>, vector<96x128xf32>
    tpu.vector_store %arg8[%c0_55, %c0_56], %172 {strides = array<i32>} : memref<96x128xf32, #tpu.memory_space<vmem>>, vector<96x128xf32>,
    return
  }
  func.func @transform_0(%arg0: i32) -> (i32, i32) {
    %c0_i32 = arith.constant 0 : i32
    %c0_i32_0 = arith.constant 0 : i32
    return %arg0, %c0_i32 : i32, i32
  }
  func.func @transform_1(%arg0: i32) -> (i32, i32) {
    %c0_i32 = arith.constant 0 : i32
    %c0_i32_0 = arith.constant 0 : i32
    %c0_i32_1 = arith.constant 0 : i32
    return %c0_i32, %c0_i32_0 : i32, i32
  }
  func.func @transform_2(%arg0: i32) -> (i32, i32) {
    %c0_i32 = arith.constant 0 : i32
    %c0_i32_0 = arith.constant 0 : i32
    %c0_i32_1 = arith.constant 0 : i32
    return %c0_i32, %c0_i32_0 : i32, i32
  }
  func.func @transform_3(%arg0: i32) -> (i32, i32) {
    %c0_i32 = arith.constant 0 : i32
    %c0_i32_0 = arith.constant 0 : i32
    %c0_i32_1 = arith.constant 0 : i32
    return %c0_i32, %c0_i32_0 : i32, i32
  }
  func.func @transform_4(%arg0: i32) -> (i32, i32) {
    %c0_i32 = arith.constant 0 : i32
    %c0_i32_0 = arith.constant 0 : i32
    %c0_i32_1 = arith.constant 0 : i32
    return %c0_i32, %c0_i32_0 : i32, i32
  }
  func.func @transform_5(%arg0: i32) -> (i32, i32) {
    %c0_i32 = arith.constant 0 : i32
    %c0_i32_0 = arith.constant 0 : i32
    %c0_i32_1 = arith.constant 0 : i32
    return %c0_i32, %c0_i32_0 : i32, i32
  }
  func.func @transform_6(%arg0: i32) -> (i32, i32) {
    %c0_i32 = arith.constant 0 : i32
    %c0_i32_0 = arith.constant 0 : i32
    %c0_i32_1 = arith.constant 0 : i32
    return %c0_i32, %c0_i32_0 : i32, i32
  }
  func.func @transform_7(%arg0: i32) -> (i32, i32) {
    %c0_i32 = arith.constant 0 : i32
    %c0_i32_0 = arith.constant 0 : i32
    return %arg0, %c0_i32 : i32, i32
  }
}

</mosaic_0001>

<bundles_post_ra>
// kernel: tpu_custom_call.1
= control target key start
LH: loop header
LB: loop body
LE: loop exit
PB: predicated region body
PF: predicated region fallthrough
CT: control target
= control target key end

     0   :  { %s4447_s0 = inlined_call_operand.hbm [shape: f32[192,128], index: 0, kind: input, shape index: {}]   ;;  %s4448_s1 = inlined_call_operand.hbm [shape: f32[128,128], index: 1, kind: input, shape index: {}]   ;;  %s4449_s2 = inlined_call_operand.vmem [shape: f32[1,128], index: 2, kind: input, shape index: {}]   ;;  %s4450_s3 = inlined_call_operand.hbm [shape: f32[9,128], index: 3, kind: input, shape index: {}]   ;;  %s4451_s4 = inlined_call_operand.vmem [shape: f32[1,128], index: 4, kind: input, shape index: {}]   ;;  %s4452_s5 = inlined_call_operand.hbm [shape: f32[128,128], index: 5, kind: input, shape index: {}]   ;;  %s4453_s6 = inlined_call_operand.vmem [shape: f32[1,128], index: 6, kind: input, shape index: {}]   ;;  %s4454_s7 = inlined_call_operand.hbm [shape: f32[192,128], index: 7, kind: output, shape index: {}]  }
   0x1   :  { %4496 = sst [smem:[#allocation41_spill]] %s4448_s1 }
   0x2   :  { %12 = vsyncpa [#allocation4], 0 }
   0x3   :  { %14 = vsyncpa [#allocation4 + $0x1], 0 }
   0x4   :  { %15 = vsyncpa [#allocation7], 0 }
   0x5   :  { %16 = vsyncpa [#allocation10], 0 }
   0x6   :  { %17 = vsyncpa [#allocation5], 0 }
   0x7   :  { %19 = vsyncpa [#allocation5 + $0x1], 0  ;;  %s2662_s24 = smov 0   ;;  %s2664_s25 = smov 0  }
   0x8   :  { %s2666_s26 = smov 0   ;;  %s2668_s27 = smov 0  }
   0x9 LB: > { %s2683_s28 = sadd.s32 4294967295, %s2609_s27   ;;  %s2047_s29 = sadd.s32 4294967294, %s2609_s27   ;;  %s2609_s27 = sphi %s2668_s27, %s4711_s27   ;;  %s2605_s26 = sphi %s2666_s26, %s4710_s26   ;;  %s2601_s25 = sphi %s2664_s25, %s4709_s25   ;;  %s2597_s24 = sphi %s2662_s24, %s4708_s24  }
   0xa   : > { %p45_p0 = scmp.ne.s32.totalorder %s2601_s25, %s2597_s24  ;;  %p4455_p1 = scmp.eq.s32.totalorder %s2683_s28, 0 }
   0xb   : > { %p195_p2 = scmp.eq.s32.totalorder %s2683_s28, 1  ;;  %p201_p3 = scmp.eq.s32.totalorder %s2047_s29, 1 }
   0xc   : > { %p2692_p4 = por %p4455_p1, %p45_p0  ;;  %p2048_p5 = scmp.ge.s32.totalorder %s2609_s27, 1 }
   0xd   : > { %p2697_p6 = por %p201_p3, %p45_p0  ;;  %p208_p7 = scmp.lt.s32.totalorder %s2609_s27, 3 }
   0xe   : > { %s4497_s30 = scalar_select %p2692_p4, 1, 0 }
   0xf   : > { %s4498_s8 = scalar_select %p2697_p6, 1, 0 }
  0x10   : > { %p2702_p8 = pnand %p2048_p5, %p208_p7  ;;  %s2611_s10 = smov [#allocation6]  }
  0x11   : > { %s220_s11 = sshll.u32 %s2611_s10, 4  ;;  %s2612_s13 = smov [#allocation8]   ;;  %s221_s11 = int_to_ptr.vmem [resolvable:$true] %s220_s11 }
  0x12   : > { %s4499_s9 = scalar_select %p2702_p8, 1, 0 }
  0x13   : > { %p2313_p9 = pneg %p2702_p8  ;;  %s236_s14 = sshll.u32 %s2612_s13, 4  ;;  %s237_s14 = int_to_ptr.vmem [resolvable:$true] %s236_s14 }
  0x14   : > { %s2613_s15 = smov [#allocation9]   ;;  %s2442_s17 = scalar_lea.vmem %s221_s11, 2048 }
  0x15   : > { %p2711_p11 = pnand %p2313_p9, %p4455_p1  ;;  %s252_s16 = sshll.u32 %s2613_s15, 4  ;;  %s253_s16 = int_to_ptr.vmem [resolvable:$true] %s252_s16 }
  0x16   : > { %p2443_p13 = scmp.ne.s32.totalorder %s221_s11, %s2442_s17  ;;  %p2450_p5 = scmp.lt.s32.totalorder %s221_s11, %s221_s11 }
  0x17   : > { %p2433_p12 = pneg %p2711_p11  ;;  %p2451_p7 = scmp.lt.s32.totalorder %s2442_s17, %s2442_s17 }
  0x19   : > { %p2445_p0 = pnand %p2443_p13, %p2433_p12  ;;  %p2452_p9 = por %p2451_p7, %p2450_p5 }
  0x1b   : > { %p2446_p3 = pneg %p2445_p0 }
  0x1d   : > { %p2453_p10 = pnand %p2452_p9, %p2446_p3 }
  0x1f   : > { %2456 = shalt.err (!%p2453_p10)
}
  0x20   : > { %s4456_s18 = smov 128   ;;  %s4457_s19 = smov 8  }
  0x21   : > { %s4501_s1 = sld [smem:[#allocation41_spill]]  ;;  %s2468_s22 = scalar_lea.vmem %s237_s14, 256 }
  0x22   : > { %p2469_p13 = scmp.ne.s32.totalorder %s237_s14, %s2468_s22  ;;  %p2476_p3 = scmp.lt.s32.totalorder %s237_s14, %s237_s14 }
  0x23   : > { %p2477_p10 = scmp.lt.s32.totalorder %s2468_s22, %s2468_s22 }
  0x24   : > { %p2471_p0 = pnand %p2469_p13, %p2433_p12 }
  0x25   : > { %p2478_p7 = por %p2477_p10, %p2476_p3 }
  0x26   : > { %p2472_p5 = pneg %p2471_p0 }
  0x27   : > { %2316 = dma.hbm_to_vmem [thread:$0]  (!%p2711_p11), %s4501_s1, 2048, %s221_s11, [#allocation7], %s4456_s18, %s4456_s18, %s4457_s19  }
  0x28   : > { %p2479_p9 = pnand %p2478_p7, %p2472_p5 }
  0x2a   : > { %2482 = shalt.err (!%p2479_p9)
}
  0x2b   : > { %2319 = dma.hbm_to_vmem [thread:$0]  (!%p2711_p11), %s4450_s3, 256, %s237_s14, [#allocation7], %s4456_s18, %s4456_s18, %s4457_s19  }
  0x2c   : > { %s2494_s10 = scalar_lea.vmem %s253_s16, 2048  ;;  %p2502_p3 = scmp.lt.s32.totalorder %s253_s16, %s253_s16 }
  0x2d   : > { %p2495_p1 = scmp.ne.s32.totalorder %s253_s16, %s2494_s10  ;;  %p2503_p5 = scmp.lt.s32.totalorder %s2494_s10, %s2494_s10 }
  0x2f   : > { %p2497_p13 = pnand %p2495_p1, %p2433_p12  ;;  %p2504_p10 = por %p2503_p5, %p2502_p3 }
  0x31   : > { %p2498_p0 = pneg %p2497_p13 }
  0x33   : > { %p2505_p7 = pnand %p2504_p10, %p2498_p0 }
  0x35   : > { %2508 = shalt.err (!%p2505_p7)
}
  0x36   : > { %2322 = dma.hbm_to_vmem [thread:$0]  (!%p2711_p11), %s4452_s5, 2048, %s253_s16, [#allocation10], %s4456_s18, %s4456_s18, %s4457_s19  }
  0x37   : > { %s2751_s14 = sadd.s32 1, %s2609_s27   ;;  %s32_s15 = sadd.s32 1, %s2605_s26 }
  0x38   : > { %s29_s12 = ssub.s32 %s2609_s27, %s2751_s14  ;;  %p39_p12 = scmp.ne.s32.totalorder %s2605_s26, %s2601_s25 }
  0x39   : > { %p30_p1 = scmp.eq.s32.totalorder %s29_s12, 0  ;;  %p40_p9 = scmp.eq.s32.totalorder %s2609_s27, 0 }
  0x3a   : > { %p2334_p13 = scmp.lt.s32.totalorder %s2609_s27, 2  ;;  %p2765_p3 = por %p195_p2, %p39_p12 }
  0x3b   : > { %s2761_s17 = scalar_select %p30_p1, %s2605_s26, %s32_s15  }
  0x3c   : > { %p41_p0 = por %p40_p9, %p39_p12  ;;  %s269_s21 = sand.u32 1, %s2605_s26  }
  0x3d   : > { %s4502_s20 = scalar_select %p2765_p3, 1, 0 }
  0x3e   : > { %s2113_s22 = smul.u32 1536, %s2609_s27  ;;  %p2771_p11 = pnand %p2334_p13, %p41_p0 }
  0x3f   : > { %s2271_s16 = smul.u32 96, %s269_s21  ;;  %s2782_s15 = scalar_lea.sflag [#allocation4], %s269_s21 }
  0x40   : > { %s2778_s11 = scalar_lea.hbm %s4447_s0, %s2113_s22  ;;  %p2511_p5 = pneg %p2771_p11 }
  0x41   : > { %s273_s13 = scalar_lea.vmem [#allocation3], %s2271_s16  ;;  %s2509_s18 = scalar_lea.hbm %s2778_s11, 1536 }
  0x42   : > { %s280_s12 = sshll.u32 %s273_s13, 4  ;;  %p2510_p2 = scmp.ne.s32.totalorder %s2778_s11, %s2509_s18  ;;  %s2780_s12 = int_to_ptr.vmem [resolvable:$true] %s280_s12 }
  0x43   : > { %s2514_s22 = scalar_lea.hbm %s4447_s0, 3072  ;;  %p2515_p1 = scmp.lt.s32.totalorder %s2778_s11, %s4447_s0 }
  0x44   : > { %p2512_p10 = pnand %p2511_p5, %p2510_p2  ;;  %p2516_p12 = scmp.lt.s32.totalorder %s2514_s22, %s2509_s18 }
  0x46   : > { %p2513_p7 = pneg %p2512_p10  ;;  %p2517_p9 = por %p2516_p12, %p2515_p1 }
  0x48   : > { %p2518_p13 = pnand %p2517_p9, %p2513_p7 }
  0x4a   : > { %2521 = shalt.err (!%p2518_p13)
}
  0x4b   : > { %s2522_s21 = scalar_lea.vmem %s2780_s12, 1536  ;;  %s2616_s16 = smov [#allocation3]  }
  0x4c   : > { %p2523_p0 = scmp.ne.s32.totalorder %s2780_s12, %s2522_s21  ;;  %s2527_s13 = sshll.u32 %s2616_s16, 4  ;;  %s2528_s13 = int_to_ptr.vmem [resolvable:$false] %s2527_s13 }
  0x4d   : > { %s2529_s19 = scalar_lea.vmem %s2528_s13, 3072  ;;  %p2530_p10 = scmp.lt.s32.totalorder %s2780_s12, %s2528_s13 }
  0x4e   : > { %p2525_p6 = pnand %p2523_p0, %p2511_p5  ;;  %p2531_p3 = scmp.lt.s32.totalorder %s2529_s19, %s2522_s21 }
  0x50   : > { %p2526_p2 = pneg %p2525_p6  ;;  %p2532_p4 = por %p2531_p3, %p2530_p10 }
  0x52   : > { %p2533_p8 = pnand %p2532_p4, %p2526_p2 }
  0x54   : > { %2536 = shalt.err (!%p2533_p8)
}
  0x55   : > { %s4504_s1 = smov 8   ;;  %s4505_s18 = smov 128  }
  0x56   : > { %2326 = dma.hbm_to_vmem [thread:$0]  (!%p2771_p11), %s2778_s11, 1536, %s2780_s12, %s2782_s15, %s4505_s18, %s4505_s18, %s4504_s1  }
  0x57   : > { %p4506_p6 = scmp.ne.s32.totalorder %s4499_s9, 0 }
  0x59   : > { %292 = sbr.rel (%p4506_p6) target bundleno = 746 (0x2ea), region = 48 }
  0x5e   : > { %s2809_s29 = sand.u32 1, %s2601_s25   ;;  %p4507_p4 = scmp.ne.s32.totalorder %s4497_s30, 0 }
  0x5f   : > { %s2272_s22 = smul.u32 96, %s2809_s29  ;;  %s295_s10 = scalar_lea.sflag [#allocation4], %s2809_s29 }
  0x61   : > { %s2815_s23 = scalar_lea.vmem [#allocation3], %s2272_s22 }
  0x62   : > { %2580 = dma.done.wait (%p4507_p4), %s295_s10, 1536  }
  0x63   : > { %2582 = vsyncadd (%p4507_p4), %s295_s10, 4294965760  ;;  %p4508_p8 = scmp.eq.s32.totalorder %s2683_s28, 0 }
  0x65   : > { %2584 = dma.done.wait (%p4508_p8), [#allocation7], 2304   ;;  %p4509_p3 = pmov %p4508_p8 }
  0x67   : > { %2586 = vsyncadd (%p4509_p3), [#allocation7], 4294964992  ;;  %p4510_p11 = pmov %p4509_p3 }
  0x68   : > { %p4511_p5 = pmov %p4509_p3 }
  0x69   : > { %2588 = dma.done.wait (%p4510_p11), [#allocation10], 2048  }
  0x6a   : > { %2590 = vsyncadd (%p4511_p5), [#allocation10], 4294965248  ;;  %v867_v0 = vld [vmem:[#allocation6 + $0x78] sm:$0xff]  ;;  %v866_v1 = vld [vmem:[#allocation6 + $0x70] sm:$0xff]  ;;  %v4464_v28 = vmov 0.0   ;;  %v347_v29 = vlaneseq  ;;  %s4383_s16 = scalar_lea.vmem [#allocation11], %s2272_s22 }
  0x6b   : > { %2171 = vmatprep.subr.mxu0 %v867_v0  ;;  %v865_v2 = vld [vmem:[#allocation6 + $0x68] sm:$0xff]  ;;  %v864_v3 = vld [vmem:[#allocation6 + $0x60] sm:$0xff]  ;;  %v863_v5 = vld [vmem:[#allocation6 + $0x58] sm:$0xff]  ;;  %345 = vst [vmem:[#allocation2 + $0x70] sm:$0xff] %v4464_v28  ;;  %s2114_s13 = smul.u32 1536, %s2683_s28  ;;  %s1945_s19 = sshll.u32 %s4383_s16, 4  ;;  %s4403_s19 = int_to_ptr.vmem [resolvable:$true] %s1945_s19 }
  0x6c   : > { %2172 = vmatpush3.msra.mxu0 %v867_v0  ;;  %v840_v4 = vld [vmem:[%s2815_s23] sm:$0xff]  ;;  %v862_v6 = vld [vmem:[#allocation6 + $0x50] sm:$0xff]  ;;  %v861_v7 = vld [vmem:[#allocation6 + $0x48] sm:$0xff]  ;;  %343 = vst [vmem:[#allocation2] sm:$0xff] %v4464_v28  ;;  %v2845_v30 = vshrl.u32 %v347_v29, 7  ;;  %s1932_s10 = scalar_lea.sflag [#allocation5], %s2809_s29 }
  0x6d   : > { %2173 = vmatprep.subr.mxu0 %v866_v1  ;;  %2203 = vmatprep.mubr.f32.mxu0 %v840_v4  ;;  %v860_v8 = vld [vmem:[#allocation6 + $0x40] sm:$0xff]  ;;  %v859_v9 = vld [vmem:[#allocation6 + $0x38] sm:$0xff]  ;;  %v858_v10 = vld [vmem:[#allocation6 + $0x30] sm:$0xff]  ;;  %344 = vst [vmem:[#allocation2 + $0x8] sm:$0xff] %v4464_v28  ;;  %s4400_s22 = scalar_lea.hbm %s4454_s7, %s2114_s13  ;;  %p4705_p1 = scmp.ne.s32.totalorder %s4502_s20, 0 }
  0x6e   : > { %2174 = vmatpush3.msra.mxu0 %v866_v1  ;;  %v857_v11 = vld [vmem:[#allocation6 + $0x28] sm:$0xff]  ;;  %v856_v12 = vld [vmem:[#allocation6 + $0x20] sm:$0xff]  ;;  %v855_v13 = vld [vmem:[#allocation6 + $0x18] sm:$0xff]  ;;  %346 = vst [vmem:[#allocation2 + $0x78] sm:$0xff] %v4464_v28  ;;  %v349_v31 = vadd.s32 8, %v2845_v30  ;;  %v2852_v34 = vadd.s32 16, %v2845_v30 }
  0x6f   : > { %2175 = vmatprep.subr.mxu0 %v865_v2  ;;  %v854_v14 = vld [vmem:[#allocation6 + $0x10] sm:$0xff]  ;;  %v853_v15 = vld [vmem:[#allocation6 + $0x8] sm:$0xff]  ;;  %v852_v16 = vld [vmem:[#allocation6] sm:$0xff]  ;;  %v2856_v36 = vmul.u32.u64.low 2863311531, %v2845_v30  ;;  %v2857_v37 = vmul.u32.u64.high 2863311531, %v2845_v30, %v2856_v36  ;;  %v2860_v38 = vadd.s32 24, %v2845_v30 }
  0x70   : > { %2176 = vmatpush3.msra.mxu0 %v865_v2  ;;  %v841_v17 = vld [vmem:[%s2815_s23 + $0x8] sm:$0xff]  ;;  %v842_v18 = vld [vmem:[%s2815_s23 + $0x10] sm:$0xff]  ;;  %v843_v19 = vld [vmem:[%s2815_s23 + $0x18] sm:$0xff]  ;;  %v2848_v32 = vmul.u32.u64.low 2863311531, %v349_v31  ;;  %v2849_v33 = vmul.u32.u64.high 2863311531, %v349_v31, %v2848_v32  ;;  %v2867_v41 = vadd.s32 32, %v2845_v30 }
  0x71   : > { %2177 = vmatprep.subr.mxu0 %v864_v3  ;;  %v844_v20 = vld [vmem:[%s2815_s23 + $0x20] sm:$0xff]  ;;  %v845_v21 = vld [vmem:[%s2815_s23 + $0x28] sm:$0xff]  ;;  %v846_v22 = vld [vmem:[%s2815_s23 + $0x30] sm:$0xff]  ;;  %v2863_v39 = vmul.u32.u64.low 2863311531, %v2852_v34  ;;  %v2864_v40 = vmul.u32.u64.high 2863311531, %v2852_v34, %v2863_v39  ;;  %v2870_v42 = vadd.s32 40, %v2845_v30 }
  0x72   : > { %2178 = vmatpush3.msra.mxu0 %v864_v3  ;;  %v847_v23 = vld [vmem:[%s2815_s23 + $0x38] sm:$0xff]  ;;  %v848_v24 = vld [vmem:[%s2815_s23 + $0x40] sm:$0xff]  ;;  %v849_v25 = vld [vmem:[%s2815_s23 + $0x48] sm:$0xff]  ;;  %v377_v35 = vshrl.u32 %v2849_v33, 6  ;;  %v2873_v44 = vmul.u32.u64.low 2863311531, %v2860_v38  ;;  %v2874_v45 = vmul.u32.u64.high 2863311531, %v2860_v38, %v2873_v44 }
  0x73   : > { %2179 = vmatprep.subr.mxu0 %v863_v5  ;;  %v850_v26 = vld [vmem:[%s2815_s23 + $0x50] sm:$0xff]  ;;  %v851_v27 = vld [vmem:[%s2815_s23 + $0x58] sm:$0xff]  ;;  %v1786_v46 = vld [vmem:[#allocation9 + $0x78] sm:$0xff]  ;;  %v2877_v47 = vmul.u32.u64.low 2863311531, %v2867_v41  ;;  %v2878_v48 = vmul.u32.u64.high 2863311531, %v2867_v41, %v2877_v47  ;;  %v366_v53 = vshrl.u32 %v2857_v37, 6 }
  0x74   : > { %2180 = vmatpush3.msra.mxu0 %v863_v5  ;;  %v378_v43 = vmul.u32 96, %v377_v35  ;;  %2221 = vmatprep.subr.mxu1 %v1786_v46  ;;  %v2881_v49 = vmul.u32.u64.low 2863311531, %v2870_v42  ;;  %v2882_v50 = vmul.u32.u64.high 2863311531, %v2870_v42, %v2881_v49  ;;  %v1785_v51 = vld [vmem:[#allocation9 + $0x70] sm:$0xff]  ;;  %v388_v54 = vshrl.u32 %v2864_v40, 6  ;;  %v1784_v56 = vld [vmem:[#allocation9 + $0x68] sm:$0xff] }
  0x75   : > { %2181 = vmatprep.subr.mxu0 %v862_v6  ;;  %2222 = vmatpush3.msra.mxu1 %v1786_v46  ;;  %v2887_v55 = vadd.s32 56, %v2845_v30  ;;  %v2890_v57 = vadd.s32 48, %v2845_v30  ;;  %v1783_v58 = vld [vmem:[#allocation9 + $0x60] sm:$0xff]  ;;  %v2893_v59 = vadd.s32 88, %v2845_v30  ;;  %v1782_v60 = vld [vmem:[#allocation9 + $0x58] sm:$0xff]  ;;  %v367_v61 = vmul.u32 96, %v366_v53 }
  0x76   : > { %2182 = vmatpush3.msra.mxu0 %v862_v6  ;;  %v379_v52 = vsub.s32 %v349_v31, %v378_v43  ;;  %2223 = vmatprep.subr.mxu1 %v1785_v51  ;;  %v399_v62 = vshrl.u32 %v2874_v45, 6  ;;  %v389_v63 = vmul.u32 96, %v388_v54  ;;  %v1781_v2 = vld [vmem:[#allocation9 + $0x50] sm:$0xff]  ;;  %v410_v3 = vshrl.u32 %v2878_v48, 6  ;;  %v1775_v44 = vld [vmem:[#allocation9 + $0x20] sm:$0xff]  ;;  %s2537_s23 = scalar_lea.vmem %s4403_s19, 1536 }
  0x77   : > { %2183 = vmatprep.subr.mxu0 %v861_v7  ;;  %2224 = vmatpush3.msra.mxu1 %v1785_v51  ;;  %v2897_v0 = vmul.u32.u64.low 2863311531, %v2887_v55  ;;  %v2898_v1 = vmul.u32.u64.high 2863311531, %v2887_v55, %v2897_v0  ;;  %v2902_v4 = vmul.u32.u64.low 2863311531, %v2890_v57  ;;  %v2903_v5 = vmul.u32.u64.high 2863311531, %v2890_v57, %v2902_v4  ;;  %v1777_v31 = vld [vmem:[#allocation9 + $0x30] sm:$0xff]  ;;  %p2538_p7 = scmp.ne.s32.totalorder %s4403_s19, %s2537_s23  ;;  %s2619_s28 = smov [#allocation11]  }
  0x78   : > { %2184 = vmatpush3.msra.mxu0 %v861_v7  ;;  %2225 = vmatprep.subr.mxu1 %v1784_v56  ;;  %vm493_vm0 = vcmp.ne.s32.totalorder %v379_v52, 0  ;;  %vm505_vm1 = vcmp.lt.s32.totalorder %v379_v52, 0  ;;  %v2906_v6 = vadd.s32 72, %v2845_v30  ;;  %v421_v7 = vshrl.u32 %v2882_v50, 6  ;;  %v1774_v50 = vld [vmem:[#allocation9 + $0x18] sm:$0xff]  ;;  %s2541_s30 = sshll.u32 %s2619_s28, 4  ;;  %s2542_s30 = int_to_ptr.vmem [resolvable:$false] %s2541_s30 }
  0x79   : > { %2185 = vmatprep.subr.mxu0 %v860_v8  ;;  %2226 = vmatpush3.msra.mxu1 %v1784_v56  ;;  %vm2918_vm2 = vmand %vm505_vm1, %vm493_vm0  ;;  %v443_v29 = vshrl.u32 %v2898_v1, 6  ;;  %v432_v33 = vshrl.u32 %v2903_v5, 6  ;;  %v1772_v5 = vld [vmem:[#allocation9 + $0x8] sm:$0xff]  ;;  %p2539_p12 = pnand %p2538_p7, %p4705_p1  ;;  %s2543_s9 = scalar_lea.vmem %s2542_s30, 3072 }
  0x7a   : > { %2186 = vmatpush3.msra.mxu0 %v860_v8  ;;  %2227 = vmatprep.subr.mxu1 %v1783_v58  ;;  %p2544_p13 = scmp.lt.s32.totalorder %s4403_s19, %s2542_s30  ;;  %p2545_p0 = scmp.lt.s32.totalorder %s2543_s9, %s2537_s23 }
  0x7b   : > { %2187 = vmatprep.subr.mxu0 %v859_v9  ;;  %2228 = vmatpush3.msra.mxu1 %v1783_v58  ;;  %v444_v43 = vmul.u32 96, %v443_v29  ;;  %v433_v46 = vmul.u32 96, %v432_v33  ;;  %p2540_p9 = pneg %p2539_p12 }
  0x7c   : > { %2188 = vmatpush3.msra.mxu0 %v859_v9  ;;  %2229 = vmatprep.subr.mxu1 %v1782_v60  ;;  %v2910_v8 = vmul.u32.u64.low 2863311531, %v2893_v59  ;;  %v2911_v9 = vmul.u32.u64.high 2863311531, %v2893_v59, %v2910_v8  ;;  %p2546_p2 = por %p2545_p0, %p2544_p13 }
  0x7d   : > { %2189 = vmatprep.subr.mxu0 %v858_v10  ;;  %2230 = vmatpush3.msra.mxu1 %v1782_v60  ;;  %v434_v0 = vsub.s32 %v2890_v57, %v433_v46 }
  0x7e   : > { %2190 = vmatpush3.msra.mxu0 %v858_v10  ;;  %v2914_v10 = vadd.s32 80, %v2845_v30  ;;  %2231 = vmatprep.subr.mxu1 %v1781_v2  ;;  %v487_v37 = vshrl.u32 %v2911_v9, 6  ;;  %p2547_p10 = pnand %p2546_p2, %p2540_p9 }
  0x7f   : > { %2191 = vmatprep.subr.mxu0 %v857_v11  ;;  %2232 = vmatpush3.msra.mxu1 %v1781_v2 }
  0x80   : > { %2192 = vmatpush3.msra.mxu0 %v857_v11  ;;  %v1780_v11 = vld [vmem:[#allocation9 + $0x48] sm:$0xff]  ;;  %v488_v48 = vmul.u32 96, %v487_v37 }
  0x81   : > { %2193 = vmatprep.subr.mxu0 %v856_v12  ;;  %2233 = vmatprep.subr.mxu1 %v1780_v11 }
  0x82   : > { %2194 = vmatpush3.msra.mxu0 %v856_v12  ;;  %v529_v12 = vadd.s32 96, %v379_v52  ;;  %2234 = vmatpush3.msra.mxu1 %v1780_v11  ;;  %v1771_v11 = vld [vmem:[#allocation9] sm:$0xff] }
  0x83   : > { %2195 = vmatprep.subr.mxu0 %v855_v13 }
  0x84   : > { %2196 = vmatpush3.msra.mxu0 %v855_v13 }
  0x85   : > { %2197 = vmatprep.subr.mxu0 %v854_v14 }
  0x86   : > { %2198 = vmatpush3.msra.mxu0 %v854_v14  ;;  %v368_v14 = vsub.s32 %v2845_v30, %v367_v61 }
  0x87   : > { %2199 = vmatprep.subr.mxu0 %v853_v15 }
  0x88   : > { %2200 = vmatpush3.msra.mxu0 %v853_v15  ;;  %v400_v15 = vmul.u32 96, %v399_v62  ;;  %vm492_vm3 = vcmp.ne.s32.totalorder %v368_v14, 0  ;;  %vm504_vm4 = vcmp.lt.s32.totalorder %v368_v14, 0  ;;  %v528_v40 = vadd.s32 96, %v368_v14 }
  0x89   : > { %2201 = vmatprep.subr.mxu0 %v852_v16  ;;  %vm2958_vm7 = vmand %vm504_vm4, %vm492_vm3  ;;  %v445_v62 = vsub.s32 %v2887_v55, %v444_v43  ;;  %vm498_vm4 = vcmp.ne.s32.totalorder %v434_v0, 0 }
  0x8a   : > { %2202 = vmatpush3.msra.mxu0 %v852_v16  ;;  %v1779_v16 = vld [vmem:[#allocation9 + $0x40] sm:$0xff] }
  0x8b   : > { %2204 = vmatmul.mubr.f32.vlgmr.msra.gmra.mxu0 %v841_v17  ;;  %v411_v17 = vmul.u32 96, %v410_v3  ;;  %2235 = vmatprep.subr.mxu1 %v1779_v16  ;;  %v489_v3 = vsub.s32 %v2893_v59, %v488_v48  ;;  %vm511_vm3 = vcmp.lt.s32.totalorder %v445_v62, 0 }
  0x8c   : > { %2206 = vmatprep.mubr.f32.mxu0 %v842_v18  ;;  %2236 = vmatpush3.msra.mxu1 %v1779_v16 }
  0x8d   : > { %v2944_v32 = vsub.s32 %v2867_v41, %v411_v17 }
  0x8f   : > { %2207 = vmatmul.mubr.f32.gmra.mxu0 %v843_v19  ;;  %v2924_v18 = vmul.u32.u64.low 2863311531, %v2906_v6  ;;  %v2925_v19 = vmul.u32.u64.high 2863311531, %v2906_v6, %v2924_v18  ;;  %vm496_vm11 = vcmp.ne.s32.totalorder %v2944_v32, 0  ;;  %vm508_vm12 = vcmp.lt.s32.totalorder %v2944_v32, 0 }
  0x90   : > { %2209 = vmatprep.mubr.f32.mxu0 %v844_v20  ;;  %v2928_v20 = vadd.s32 64, %v2845_v30  ;;  %vm2996_vm0 = vmand %vm508_vm12, %vm496_vm11  ;;  %v532_v61 = vadd.s32 96, %v2944_v32  ;;  %v534_v18 = vadd.s32 96, %v434_v0 }
  0x91   : > { %v465_v47 = vshrl.u32 %v2925_v19, 6 }
  0x92   : > { %v3026_v59 = vsel %vm2996_vm0, %v532_v61, %v2944_v32 }
  0x93   : > { %2210 = vmatmul.mubr.f32.gmra.mxu0 %v845_v21  ;;  %v390_v21 = vsub.s32 %v2852_v34, %v389_v63  ;;  %v2948_v34 = vmul.u32.u64.low 2863311531, %v2928_v20  ;;  %v2949_v35 = vmul.u32.u64.high 2863311531, %v2928_v20, %v2948_v34  ;;  %v1773_v63 = vld [vmem:[#allocation9 + $0x10] sm:$0xff]  ;;  %v466_v1 = vmul.u32 96, %v465_v47 }
  0x94   : > { %2212 = vmatprep.mubr.f32.mxu0 %v846_v22  ;;  %v422_v22 = vmul.u32 96, %v421_v7 }
  0x95   : > { %vm494_vm5 = vcmp.ne.s32.totalorder %v390_v21, 0  ;;  %vm506_vm6 = vcmp.lt.s32.totalorder %v390_v21, 0  ;;  %v454_v2 = vshrl.u32 %v2949_v35, 6 }
  0x96   : > { %v423_v36 = vsub.s32 %v2870_v42, %v422_v22  ;;  %v530_v42 = vadd.s32 96, %v390_v21  ;;  %vm2966_vm10 = vmand %vm506_vm6, %vm494_vm5  ;;  %vm510_vm5 = vcmp.lt.s32.totalorder %v434_v0, 0  ;;  %vm503_vm6 = vcmp.ne.s32.totalorder %v489_v3, 0 }
  0x97   : > { %2213 = vmatmul.mubr.f32.gmra.mxu0 %v847_v23  ;;  %v455_v13 = vmul.u32 96, %v454_v2 }
  0x98   : > { %2215 = vmatprep.mubr.f32.mxu0 %v848_v24  ;;  %v2932_v23 = vmul.u32.u64.low 2863311531, %v2914_v10  ;;  %v2933_v24 = vmul.u32.u64.high 2863311531, %v2914_v10, %v2932_v23  ;;  %vm497_vm13 = vcmp.ne.s32.totalorder %v423_v36, 0  ;;  %vm509_vm14 = vcmp.lt.s32.totalorder %v423_v36, 0 }
  0x99   : > { %v2990_v56 = vsel %vm2966_vm10, %v530_v42, %v390_v21  ;;  %v533_v58 = vadd.s32 96, %v423_v36  ;;  %vm521_vm1 = vmand %vm509_vm14, %vm497_vm13  ;;  %v456_v22 = vsub.s32 %v2928_v20, %v455_v13 }
  0x9a   : > { %v476_v49 = vshrl.u32 %v2933_v24, 6  ;;  %v3019_v57 = vadd.s32 4294967280, %v2990_v56 }
  0x9b   : > { %2216 = vmatmul.mubr.f32.gmra.mxu0 %v849_v25  ;;  %v1778_v25 = vld [vmem:[#allocation9 + $0x38] sm:$0xff]  ;;  %v3021_v9 = vsel %vm521_vm1, %v533_v58, %v423_v36  ;;  %vm500_vm0 = vcmp.ne.s32.totalorder %v456_v22, 0  ;;  %vm512_vm1 = vcmp.lt.s32.totalorder %v456_v22, 0  ;;  %v536_v41 = vadd.s32 96, %v456_v22 }
  0x9c   : > { %2218 = vmatprep.mubr.f32.mxu0 %v850_v26  ;;  %v2937_v26 = vsel %vm2918_vm2, %v529_v12, %v379_v52  ;;  %2237 = vmatprep.subr.mxu1 %v1778_v25  ;;  %v2977_v52 = vsel %vm2958_vm7, %v528_v40, %v368_v14  ;;  %v477_v4 = vmul.u32 96, %v476_v49  ;;  %vm499_vm2 = vcmp.ne.s32.totalorder %v445_v62, 0 }
  0x9d   : > { %2238 = vmatpush3.msra.mxu1 %v1778_v25  ;;  %v2954_v39 = vadd.s32 4294967280, %v2937_v26  ;;  %v3011_v55 = vadd.s32 4294967280, %v2977_v52  ;;  %v467_v12 = vsub.s32 %v2906_v6, %v466_v1  ;;  %v535_v14 = vadd.s32 96, %v445_v62 }
  0x9e   : > { %2239 = vmatprep.subr.mxu1 %v1777_v31  ;;  %vm515_vm7 = vcmp.lt.s32.totalorder %v489_v3, 0  ;;  %v639_v17 = vsub.s32 0, %v3019_v57  ;;  %v3038_v6 = vadd.s32 4294967280, %v3026_v59  ;;  %v3043_v21 = vadd.s32 4294967280, %v3021_v9 }
  0x9f   : > { %2219 = vmatmul.mubr.f32.gmra.mxu0 %v851_v27  ;;  %v2940_v27 = vsub.s32 %v2860_v38, %v400_v15  ;;  %v1776_v38 = vld [vmem:[#allocation9 + $0x28] sm:$0xff]  ;;  %2240 = vmatpush3.msra.mxu1 %v1777_v31  ;;  %v632_v51 = vsub.s32 0, %v2954_v39  ;;  %v478_v15 = vsub.s32 %v2914_v10, %v477_v4  ;;  %v625_v16 = vsub.s32 0, %v3011_v55  ;;  %vm527_vm12 = vmand %vm515_vm7, %vm503_vm6 }
  0xa0   : > { %2241 = vmatprep.subr.mxu1 %v1776_v38  ;;  %v539_v10 = vadd.s32 96, %v489_v3  ;;  %vm501_vm10 = vcmp.ne.s32.totalorder %v467_v12, 0  ;;  %vm513_vm11 = vcmp.lt.s32.totalorder %v467_v12, 0  ;;  %v537_v31 = vadd.s32 96, %v467_v12 }
  0xa1   : > { %vm495_vm8 = vcmp.ne.s32.totalorder %v2940_v27, 0  ;;  %vm507_vm9 = vcmp.lt.s32.totalorder %v2940_v27, 0  ;;  %2242 = vmatpush3.msra.mxu1 %v1776_v38  ;;  %v531_v54 = vadd.s32 96, %v2940_v27  ;;  %v3008_v7 = vmin.u32 %v2954_v39, %v632_v51 }
  0xa2   : > { %vm2983_vm15 = vmand %vm507_vm9, %vm495_vm8  ;;  %2243 = vmatprep.subr.mxu1 %v1775_v44  ;;  %vm502_vm13 = vcmp.ne.s32.totalorder %v478_v15, 0  ;;  %vm514_vm14 = vcmp.lt.s32.totalorder %v478_v15, 0  ;;  %v2070_v25 = vmin.u32 %v3011_v55, %v625_v16  ;;  %v653_v20 = vsub.s32 0, %v3038_v6 }
  0xa3   : > { %2244 = vmatpush3.msra.mxu1 %v1775_v44  ;;  %v3016_v8 = vsel %vm2983_vm15, %v531_v54, %v2940_v27  ;;  %vm523_vm8 = vmand %vm511_vm3, %vm499_vm2  ;;  %v635_v23 = vand.u32 7, %v3008_v7  ;;  %v2072_v27 = vmin.u32 %v3019_v57, %v639_v17  ;;  %v3057_v33 = vsel %vm527_vm12, %v539_v10, %v489_v3 }
  0xa4   : > { %2245 = vmatprep.subr.mxu1 %v1774_v50  ;;  %v3035_v19 = vadd.s32 4294967280, %v3016_v8  ;;  %vm522_vm9 = vmand %vm510_vm5, %vm498_vm4  ;;  %v3049_v24 = vsel %vm523_vm8, %v535_v14, %v445_v62  ;;  %v538_v34 = vadd.s32 96, %v478_v15  ;;  %v660_v35 = vsub.s32 0, %v3043_v21 }
  0xa5   : > { %2246 = vmatpush3.msra.mxu1 %v1774_v50  ;;  %v3053_v29 = vsel %vm522_vm9, %v534_v18, %v434_v0  ;;  %vm525_vm15 = vmand %vm513_vm11, %vm501_vm10  ;;  %v3061_v36 = vadd.s32 4294967280, %v3049_v24  ;;  %vm631_vm3 = vcmp.lt.s32.totalorder %v2954_v39, 0  ;;  %v636_v38 = vsub.s32 0, %v635_v23 }
  0xa6   : > { %2247 = vmatprep.subr.mxu1 %v1773_v63  ;;  %v646_v32 = vsub.s32 0, %v3035_v19  ;;  %vm526_vm2 = vmand %vm514_vm14, %vm502_vm13  ;;  %v3066_v37 = vadd.s32 4294967280, %v3053_v29  ;;  %v3068_v40 = vsel %vm525_vm15, %v537_v31, %v467_v12  ;;  %v3071_v42 = vadd.s32 4294967280, %v3057_v33 }
  0xa7   : > { %2248 = vmatpush3.msra.mxu1 %v1773_v63  ;;  %v628_v43 = vand.u32 7, %v2070_v25  ;;  %v642_v45 = vand.u32 7, %v2072_v27  ;;  %vm524_vm4 = vmand %vm512_vm1, %vm500_vm0  ;;  %v3074_v46 = vsel %vm526_vm2, %v538_v34, %v478_v15  ;;  %v2075_v47 = vmin.u32 %v3043_v21, %v660_v35 }
  0xa8   : > { %2249 = vmatprep.subr.mxu1 %v1772_v5  ;;  %v2073_v44 = vmin.u32 %v3035_v19, %v646_v32  ;;  %v2074_v48 = vmin.u32 %v3038_v6, %v653_v20  ;;  %v674_v49 = vsub.s32 0, %v3061_v36  ;;  %v667_v50 = vsub.s32 0, %v3066_v37 }
  0xa9   : > { %2250 = vmatpush3.msra.mxu1 %v1772_v5  ;;  %v3081_v51 = vadd.s32 4294967280, %v3068_v40  ;;  %v3085_v53 = vsel %vm631_vm3, %v636_v38, %v635_v23  ;;  %v3087_v54 = vsel %vm524_vm4, %v536_v41, %v456_v22  ;;  %v702_v58 = vsub.s32 0, %v3071_v42 }
  0xaa   : > { %2251 = vmatprep.subr.mxu1 %v1771_v11  ;;  %v3091_v60 = vadd.s32 4294967280, %v3074_v46  ;;  %vm624_vm5 = vcmp.lt.s32.totalorder %v3011_v55, 0  ;;  %v629_v61 = vsub.s32 0, %v628_v43  ;;  %v649_v62 = vand.u32 7, %v2073_v44  ;;  %v3171_v44 = vld [vmem:[#allocation8] sm:$0xff] }
  0xab   : > { %2252 = vmatpush3.msra.mxu1 %v1771_v11  ;;  %v643_v63 = vsub.s32 0, %v642_v45  ;;  %vm638_vm6 = vcmp.lt.s32.totalorder %v3019_v57, 0  ;;  %v663_v0 = vand.u32 7, %v2075_v47  ;;  %v656_v1 = vand.u32 7, %v2074_v48 }
  0xac   : > { %v2077_v39 = vmin.u32 %v3061_v36, %v674_v49  ;;  %v2076_v2 = vmin.u32 %v3066_v37, %v667_v50  ;;  %v688_v3 = vsub.s32 0, %v3081_v51  ;;  %v3099_v4 = vadd.s32 4294967280, %v3087_v54 }
  0xad   : > { %vm553_vm7 = vcmp.ge.s32.totalorder %v2937_v26, 16  ;;  %vm565_vm8 = vcmp.lt.s32.totalorder %v2937_v26, 80  ;;  %v3104_v5 = vadd.s32 8, %v3085_v53  ;;  %v2081_v7 = vmin.u32 %v3071_v42, %v702_v58 }
  0xae   : > { %v695_v57 = vsub.s32 0, %v3091_v60  ;;  %v3110_v11 = vsel %vm624_vm5, %v629_v61, %v628_v43  ;;  %vm645_vm9 = vcmp.lt.s32.totalorder %v3035_v19, 0  ;;  %v650_v12 = vsub.s32 0, %v649_v62  ;;  %vm3180_vm4 = vmand %vm553_vm7, %vm565_vm8 }
  0xaf   : > { %v3113_v13 = vsel %vm638_vm6, %v643_v63, %v642_v45  ;;  %v664_v14 = vsub.s32 0, %v663_v0  ;;  %vm652_vm10 = vcmp.lt.s32.totalorder %v3038_v6, 0  ;;  %v657_v15 = vsub.s32 0, %v656_v1 }
  0xb0   : > { %v677_v16 = vand.u32 7, %v2077_v39  ;;  %vm659_vm11 = vcmp.lt.s32.totalorder %v3043_v21, 0  ;;  %v670_v17 = vand.u32 7, %v2076_v2  ;;  %v3118_v18 = vmin.u32 %v3081_v51, %v688_v3 }
  0xb1   : > { %v681_v55 = vsub.s32 0, %v3099_v4  ;;  %vm589_vm12 = vcmp.eq.s32.totalorder %v2937_v26, 95  ;;  %vm552_vm13 = vcmp.ge.s32.totalorder %v2977_v52, 16  ;;  %vm564_vm14 = vcmp.lt.s32.totalorder %v2977_v52, 80 }
  0xb2   : > { %v705_v10 = vand.u32 7, %v2081_v7  ;;  %v3125_v22 = vmin.u32 %v3091_v60, %v695_v57  ;;  %vm567_vm0 = vcmp.lt.s32.totalorder %v3016_v8, 80  ;;  %v3131_v23 = vsel %vm645_vm9, %v650_v12, %v649_v62  ;;  %vm3194_vm6 = vmand %vm552_vm13, %vm564_vm14 }
  0xb3   : > { %vm710_vm1 = vcmp.ne.s32.totalorder %v3113_v13, 0  ;;  %vm722_vm2 = vcmp.lt.s32.totalorder %v3113_v13, 0  ;;  %v3138_v25 = vadd.s32 8, %v3113_v13  ;;  %v3142_v27 = vsel %vm659_vm11, %v664_v14, %v663_v0 }
  0xb4   : > { %v3146_v19 = vsel %vm652_vm10, %v657_v15, %v656_v1  ;;  %v678_v31 = vsub.s32 0, %v677_v16  ;;  %vm673_vm5 = vcmp.lt.s32.totalorder %v3061_v36, 0  ;;  %v671_v32 = vsub.s32 0, %v670_v17  ;;  %vm3228_vm13 = vmand %vm722_vm2, %vm710_vm1 }
  0xb5   : > { %v691_v20 = vand.u32 7, %v3118_v18  ;;  %v3151_v34 = vmin.u32 %v3099_v4, %v681_v55  ;;  %v3155_v35 = vadd.s32 8, %v3131_v23  ;;  %vm666_vm9 = vcmp.lt.s32.totalorder %v3066_v37, 0  ;;  %vm3246_vm1 = vmor %vm3180_vm4, %vm589_vm12 }
  0xb6   : > { %v706_v21 = vsub.s32 0, %v705_v10  ;;  %v698_v6 = vand.u32 7, %v3125_v22  ;;  %v3161_v36 = vadd.s32 8, %v3142_v27  ;;  %v3164_v38 = vadd.s32 8, %v3146_v19 }
  0xb7   : > { %vm701_vm11 = vcmp.lt.s32.totalorder %v3071_v42, 0  ;;  %v1064_v41 = vsub.s32 4, %v2845_v30  ;;  %v3169_v43 = vsel %vm673_vm5, %v678_v31, %v677_v16  ;;  %v1104_v45 = vsub.s32 0, %v2845_v30 }
  0xb8   : > { %vm708_vm10 = vcmp.ne.s32.totalorder %v3110_v11, 0  ;;  %vm720_vm3 = vcmp.lt.s32.totalorder %v3110_v11, 0  ;;  %v4522_v47 = vmov 0  ;;  %v3186_v48 = vsel %vm666_vm9, %v671_v32, %v670_v17 }
  0xb9   : > { %v4523_v47 = vsel %vm3180_vm4, 4294967295, %v4522_v47  ;;  %v692_v49 = vsub.s32 0, %v691_v20  ;;  %v684_v50 = vand.u32 7, %v3151_v34  ;;  %vm709_vm5 = vcmp.ne.s32.totalorder %v3085_v53, 0 }
  0xba   : > { %v3202_v37 = vsel %vm701_vm11, %v706_v21, %v705_v10  ;;  %v699_v61 = vsub.s32 0, %v698_v6  ;;  %vm721_vm9 = vcmp.lt.s32.totalorder %v3085_v53, 0  ;;  %v744_v62 = vadd.s32 8, %v3110_v11  ;;  %vm3220_vm11 = vmand %vm720_vm3, %vm708_vm10  ;;  %v3360_v21 = vld [vmem:[%s4449_s2] ss:$0 sm:$0xff] }
  0xbb   : > { %v3209_v63 = vadd.s32 8, %v3169_v43  ;;  %vm687_vm14 = vcmp.lt.s32.totalorder %v3081_v51, 0  ;;  %vm694_vm8 = vcmp.lt.s32.totalorder %v3091_v60, 0  ;;  %v3214_v42 = vrot.slane %v3171_v44, %v1064_v41  ;;  %vm3260_vm12 = vmand %vm721_vm9, %vm709_vm5 }
  0xbc   : > { %v3235_v39 = vadd.s32 8, %v3186_v48  ;;  %v3238_v2 = vrot.slane %v3171_v44, %v1104_v45  ;;  %v1133_v3 = vsub.s32 1, %v2845_v30  ;;  %v1185_v7 = vsub.s32 2, %v2845_v30 }
  0xbd   : > { %vm719_vm10 = vcmp.ne.s32.totalorder %v3202_v37, 0  ;;  %v1226_v12 = vsub.s32 3, %v2845_v30  ;;  %v1267_v14 = vsub.s32 5, %v2845_v30  ;;  %vm4534_vm3 = vcmp.ge.s32.totalorder %v3016_v8, 16 }
  0xbe   : > { %vm3268_vm2 = vmand %vm4534_vm3, %vm567_vm0  ;;  %v4535_v15 = vmov 0  ;;  %v3276_v16 = vsel %vm687_vm14, %v692_v49, %v691_v20  ;;  %v685_v17 = vsub.s32 0, %v684_v50  ;;  %v700_v18 = vsel %vm694_vm8, %v699_v61, %v698_v6 }
  0xbf   : > { %v4536_v15 = vsel %vm3268_vm2, 4294967295, %v4535_v15  ;;  %v756_v55 = vsel %vm3220_vm11, %v744_v62, %v3110_v11  ;;  %vm4538_vm0 = vcmp.lt.s32.totalorder %v2990_v56, 80  ;;  %vm4539_vm5 = vcmp.ge.s32.totalorder %v2990_v56, 16 }
  0xc0   : > { %4537 = vst [vmem:[#allocation16_spill] sm:$0xff] %v4536_v15  ;;  %vm3289_vm9 = vmand %vm4539_vm5, %vm4538_vm0  ;;  %v4540_v10 = vmov 0  ;;  %vm680_vm15 = vcmp.lt.s32.totalorder %v3099_v4, 0  ;;  %v755_v51 = vadd.s32 8, %v3202_v37  ;;  %v1308_v60 = vsub.s32 6, %v2845_v30 }
  0xc1   : > { %v4541_v10 = vsel %vm3289_vm9, 4294967295, %v4540_v10  ;;  %v758_v11 = vsel %vm3228_vm13, %v3138_v25, %v3113_v13  ;;  %vm4542_vm11 = vcmp.lt.s32.totalorder %v3202_v37, 0  ;;  %v3312_v31 = vrot.slane %v3171_v44, %v1133_v3 }
  0xc2   : > { %vm3307_vm0 = vmand %vm4542_vm11, %vm719_vm10  ;;  %v3315_v32 = vrot.slane %v3171_v44, %v1185_v7  ;;  %v1337_v20 = vsub.s32 7, %v2845_v30  ;;  %v757_v13 = vsel %vm3260_vm12, %v3104_v5, %v3085_v53  ;;  %vm4545_vm13 = vcmp.eq.s32.totalorder %v2977_v52, 95 }
  0xc3   : > { %vm3326_vm10 = vmor %vm3194_vm6, %vm4545_vm13  ;;  %vm718_vm8 = vcmp.ne.s32.totalorder %v700_v18, 0  ;;  %vm730_vm14 = vcmp.lt.s32.totalorder %v700_v18, 0  ;;  %v3333_v30 = vrot.slane %v3171_v44, %v1226_v12  ;;  %vm4548_vm12 = vcmp.eq.s32.totalorder %v3016_v8, 95 }
  0xc4   : > { %vm3339_vm7 = vmor %vm3268_vm2, %vm4548_vm12  ;;  %v3346_v53 = vadd.s32 8, %v3276_v16  ;;  %v3352_v5 = vsel %vm680_vm15, %v685_v17, %v684_v50  ;;  %v3355_v8 = vrot.slane %v3171_v44, %v1267_v14  ;;  %vm4551_vm5 = vcmp.eq.s32.totalorder %v2990_v56, 95  ;;  %v1078_v50 = vld [vmem:[#allocation2 + $0x7] sm:$0xff] }
  0xc5   : > { %vm3366_vm13 = vmor %vm3289_vm9, %vm4551_vm5  ;;  %v767_v4 = vsel %vm3307_vm0, %v755_v51, %v3202_v37  ;;  %v754_v34 = vadd.s32 8, %v700_v18  ;;  %v3375_v41 = vrot.slane %v3171_v44, %v1308_v60  ;;  %v3385_v45 = vrot.slane %v3171_v44, %v1337_v20 }
  0xc6   : > { %vm3380_vm3 = vmand %vm730_vm14, %vm718_vm8  ;;  %vm4556_vm5 = vcmp.ge.s32.totalorder %v756_v55, 1  ;;  %v3394_v61 = vadd.s32 8, %v3352_v5  ;;  %vm4557_vm14 = vcmp.ge.s32.totalorder %v758_v11, 1  ;;  %v3401_v44 = vmul.f32 0.0, %v3312_v31 }
  0xc7   : > { %v3389_v49 = vsel %vm4556_vm5, 1.0, %v4464_v28  ;;  %v3398_v62 = vsel %vm4557_vm14, 1.0, %v4464_v28  ;;  %vm4558_vm5 = vcmp.ne.s32.totalorder %v3131_v23, 0  ;;  %vm4559_vm15 = vcmp.lt.s32.totalorder %v3131_v23, 0 }
  0xc8   : > { %vm3407_vm0 = vmand %vm4559_vm15, %vm4558_vm5  ;;  %vm779_vm14 = vcmp.ge.s32.totalorder %v767_v4, 1  ;;  %vm815_vm2 = vcmp.le.s32.totalorder %v767_v4, 6  ;;  %vm4562_vm8 = vcmp.ge.s32.totalorder %v757_v13, 1  ;;  %vm4563_vm9 = vcmp.ne.s32.totalorder %v3146_v19, 0 }
  0xc9   : > { %v3416_v3 = vsel %vm4562_vm8, 1.0, %v4464_v28  ;;  %vm4564_vm4 = vcmp.lt.s32.totalorder %v3146_v19, 0  ;;  %vm4567_vm5 = vcmp.lt.s32.totalorder %v3021_v9, 80  ;;  %vm4568_vm11 = vcmp.ge.s32.totalorder %v3021_v9, 16 }
  0xca   : > { %vm3422_vm15 = vmand %vm4564_vm4, %vm4563_vm9  ;;  %v4569_v14 = vmov 0  ;;  %v766_v26 = vsel %vm3380_vm3, %v754_v34, %v700_v18  ;;  %vm4572_vm8 = vcmp.le.s32.totalorder %v756_v55, 6  ;;  %vm4573_vm4 = vcmp.le.s32.totalorder %v757_v13, 6 }
  0xcb   : > { %vm3430_vm12 = vmand %vm4568_vm11, %vm4567_vm5  ;;  %v3438_v17 = vsel %vm4572_vm8, 1.0, %v4464_v28  ;;  %v3442_v51 = vsel %vm4573_vm4, 1.0, %v4464_v28  ;;  %v1090_v60 = vmul.f32 %v3389_v49, %v1078_v50  ;;  %vm4574_vm3 = vcmp.le.s32.totalorder %v758_v11, 6 }
  0xcc   : > { %v4570_v14 = vsel %vm3430_vm12, 4294967295, %v4569_v14  ;;  %v3453_v18 = vsel %vm4574_vm3, 1.0, %v4464_v28  ;;  %v759_v55 = vsel %vm3407_vm0, %v3155_v35, %v3131_v23  ;;  %vm4575_vm11 = vcmp.ne.s32.totalorder %v3142_v27, 0 }
  0xcd   : > { %4571 = vst [vmem:[#allocation17_spill] sm:$0xff] %v4570_v14  ;;  %vm4576_vm5 = vcmp.lt.s32.totalorder %v3142_v27, 0  ;;  %v3472_v11 = vsel %vm779_vm14, 1.0, %v4464_v28  ;;  %v3476_v23 = vsel %vm815_vm2, 1.0, %v4464_v28  ;;  %v760_v35 = vsel %vm3422_vm15, %v3164_v38, %v3146_v19 }
  0xce   : > { %vm3463_vm8 = vmand %vm4576_vm5, %vm4575_vm11  ;;  %4579 = vst [vmem:[#allocation18_spill] sm:$0xff] %v3472_v11  ;;  %vm4581_vm0 = vcmp.ne.s32.totalorder %v3186_v48, 0  ;;  %vm4582_vm3 = vcmp.lt.s32.totalorder %v3186_v48, 0  ;;  %vm4585_vm2 = vcmp.lt.s32.totalorder %v3026_v59, 80  ;;  %vm4586_vm14 = vcmp.ge.s32.totalorder %v3026_v59, 16 }
  0xcf   : > { %4580 = vst [vmem:[#allocation19_spill] sm:$0xff] %v3476_v23  ;;  %vm3486_vm11 = vmand %vm4582_vm3, %vm4581_vm0  ;;  %v4587_v19 = vmov 0  ;;  %vm778_vm0 = vcmp.ge.s32.totalorder %v766_v26, 1  ;;  %vm814_vm3 = vcmp.le.s32.totalorder %v766_v26, 6  ;;  %v1106_v50 = vmul.f32 %v3238_v2, %v1090_v60 }
  0xd0   : > { %vm3499_vm5 = vmand %vm4586_vm14, %vm4585_vm2  ;;  %vm771_vm15 = vcmp.ge.s32.totalorder %v759_v55, 1  ;;  %vm4594_vm2 = vcmp.ge.s32.totalorder %v3049_v24, 16  ;;  %v3542_v52 = vsel %vm778_vm0, 1.0, %v4464_v28  ;;  %vm4598_vm14 = vcmp.ne.s32.totalorder %v3169_v43, 0 }
  0xd1   : > { %v4588_v19 = vsel %vm3499_vm5, 4294967295, %v4587_v19  ;;  %vm4602_vm0 = vcmp.eq.s32.totalorder %v3026_v59, 95  ;;  %v3583_v59 = vsel %vm771_vm15, 1.0, %v4464_v28  ;;  %v4611_v34 = vmov 0 }
  0xd2   : > { %4589 = vst [vmem:[#allocation20_spill] sm:$0xff] %v4588_v19  ;;  %vm598_vm15 = vcmp.eq.s32.totalorder %v3074_v46, 95  ;;  %v4616_v25 = vmov 0 }
 0x14b   : > { %v2205_v37 = vpop.f32.mrf.mxu0 }
 0x14c   : > { %v947_v1 = vadd.f32 %v2205_v37, %v3360_v21  ;;  %v761_v37 = vsel %vm3463_vm8, %v3161_v36, %v3142_v27  ;;  %v762_v27 = vsel %vm3486_vm11, %v3235_v39, %v3186_v48  ;;  %vm4599_vm11 = vcmp.lt.s32.totalorder %v3169_v43, 0 }
 0x14d   : > { %v941_v12 = vpop.f32.mrf.mxu0  ;;  %vm3552_vm4 = vmand %vm4599_vm11, %vm4598_vm14  ;;  %vm774_vm11 = vcmp.ge.s32.totalorder %v762_v27, 1 }
 0x14e   : > { %v3447_v22 = vsel %vm3246_vm1, %v947_v1, 0.0  ;;  %v942_v20 = vadd.f32 %v3360_v21, %v941_v12  ;;  %v4595_v1 = vmov 0  ;;  %v3546_v12 = vsel %vm814_vm3, 1.0, %v4464_v28  ;;  %vm3565_vm3 = vmor %vm3499_vm5, %vm4602_vm0 }
 0x14f   : > { %1037 = vst [vmem:[#allocation2 + $0x18] sm:$0xff] %v3447_v22  ;;  %v2208_v13 = vpop.f32.mrf.mxu0  ;;  %vm4610_vm0 = vcmp.ge.s32.totalorder %v3053_v29, 16 }
 0x150   : > { %v3492_v56 = vsel %vm3326_vm10, %v942_v20, 0.0  ;;  %v957_v4 = vadd.f32 %v2208_v13, %v3360_v21  ;;  %vm4590_vm10 = vcmp.eq.s32.totalorder %v3021_v9, 95 }
 0x151   : > { %1036 = vst [vmem:[#allocation2 + $0x10] sm:$0xff] %v3492_v56  ;;  %v951_v38 = vpop.f32.mrf.mxu0  ;;  %vm3509_vm1 = vmor %vm3430_vm12, %vm4590_vm10  ;;  %vm4593_vm10 = vcmp.lt.s32.totalorder %v3049_v24, 80  ;;  %v1066_v7 = vmul.f32 %v3214_v42, %v3492_v56 }
 0x152   : > { %v1027_v9 = vsel %vm3339_vm7, %v957_v4, 0.0  ;;  %v952_v0 = vadd.f32 %v3360_v21, %v951_v38  ;;  %vm3527_vm9 = vmand %vm4594_vm2, %vm4593_vm10  ;;  %vm772_vm2 = vcmp.ge.s32.totalorder %v760_v35, 1  ;;  %vm4608_vm7 = vcmp.le.s32.totalorder %v759_v55, 6 }
 0x153   : > { %v4596_v1 = vsel %vm3527_vm9, 4294967295, %v4595_v1  ;;  %1039 = vst [vmem:[#allocation2 + $0x28] sm:$0xff] %v1027_v9  ;;  %v2211_v36 = vpop.f32.mrf.mxu0  ;;  %v3587_v57 = vsel %vm4608_vm7, 1.0, %v4464_v28  ;;  %v1118_v55 = vadd.f32 %v1106_v50, %v1066_v7  ;;  %v3605_v4 = vsel %vm3552_vm4, %v3209_v63, %v3169_v43 }
 0x154   : > { %4597 = vst [vmem:[#allocation21_spill] sm:$0xff] %v4596_v1  ;;  %v3558_v39 = vsel %vm3366_vm13, %v952_v0, 0.0  ;;  %v967_v60 = vadd.f32 %v2211_v36, %v3360_v21  ;;  %vm4605_vm13 = vcmp.eq.s32.totalorder %v3049_v24, 95  ;;  %vm4615_vm7 = vcmp.ge.s32.totalorder %v3068_v40, 16 }
 0x155   : > { %1038 = vst [vmem:[#allocation2 + $0x20] sm:$0xff] %v3558_v39  ;;  %v961_v20 = vpop.f32.mrf.mxu0  ;;  %vm3575_vm8 = vmor %vm3527_vm9, %vm4605_vm13  ;;  %vm4609_vm13 = vcmp.lt.s32.totalorder %v3053_v29, 80  ;;  %v3617_v9 = vsel %vm772_vm2, 1.0, %v4464_v28  ;;  %vm4620_vm4 = vcmp.ge.s32.totalorder %v761_v37, 1  ;;  %vm4625_vm2 = vcmp.le.s32.totalorder %v762_v27, 6 }
 0x156   : > { %v1029_v24 = vsel %vm3509_vm1, %v967_v60, 0.0  ;;  %v962_v13 = vadd.f32 %v3360_v21, %v961_v20  ;;  %vm3596_vm10 = vmand %vm4610_vm0, %vm4609_vm13  ;;  %vm4614_vm1 = vcmp.lt.s32.totalorder %v3068_v40, 80  ;;  %vm4619_vm0 = vcmp.le.s32.totalorder %v760_v35, 6 }
 0x157   : > { %v4612_v34 = vsel %vm3596_vm10, 4294967295, %v4611_v34  ;;  %1041 = vst [vmem:[#allocation2 + $0x38] sm:$0xff] %v1029_v24  ;;  %v2214_v38 = vpop.f32.mrf.mxu0  ;;  %vm3611_vm14 = vmand %vm4615_vm7, %vm4614_vm1  ;;  %v3621_v50 = vsel %vm4619_vm0, 1.0, %v4464_v28  ;;  %v3625_v43 = vsel %vm4620_vm4, 1.0, %v4464_v28  ;;  %vm4622_vm13 = vcmp.le.s32.totalorder %v761_v37, 6 }
 0x158   : > { %4613 = vst [vmem:[#allocation22_spill] sm:$0xff] %v4612_v34  ;;  %v4617_v25 = vsel %vm3611_vm14, 4294967295, %v4616_v25  ;;  %4621 = vst [vmem:[#allocation24_spill] sm:$0xff] %v3625_v43  ;;  %v3629_v63 = vsel %vm4622_vm13, 1.0, %v4464_v28  ;;  %v1028_v0 = vsel %vm3565_vm3, %v962_v13, 0.0  ;;  %v977_v7 = vadd.f32 %v2214_v38, %v3360_v21  ;;  %v1079_v36 = vld [vmem:[#allocation2 + $0xf] sm:$0xff] }
 0x159   : > { %4618 = vst [vmem:[#allocation23_spill] sm:$0xff] %v4617_v25  ;;  %4623 = vst [vmem:[#allocation25_spill] sm:$0xff] %v3629_v63  ;;  %v1080_v48 = vld [vmem:[#allocation2 + $0x17] sm:$0xff]  ;;  %v1159_v60 = vld [vmem:[#allocation2 + $0x9] sm:$0xff]  ;;  %v3636_v35 = vsel %vm774_vm11, 1.0, %v4464_v28  ;;  %v3640_v20 = vsel %vm4625_vm2, 1.0, %v4464_v28  ;;  %v971_v26 = vpop.f32.mrf.mxu0  ;;  %v1067_v24 = vmul.f32 %v3214_v42, %v3447_v22  ;;  %v1091_v27 = vmul.f32 %v3416_v3, %v1079_v36 }
 0x15a   : > { %4624 = vst [vmem:[#allocation26_spill] sm:$0xff] %v3636_v35  ;;  %4626 = vst [vmem:[#allocation27_spill] sm:$0xff] %v3640_v20  ;;  %vm4627_vm1 = vcmp.eq.s32.totalorder %v3053_v29, 95  ;;  %v1160_v13 = vld [vmem:[#allocation2 + $0x11] sm:$0xff]  ;;  %v1171_v38 = vmul.f32 %v3438_v17, %v1159_v60  ;;  %vm775_vm11 = vcmp.ge.s32.totalorder %v3605_v4, 1  ;;  %v1031_v29 = vsel %vm3575_vm8, %v977_v7, 0.0 }
 0x15b   : > { %1040 = vst [vmem:[#allocation2 + $0x30] sm:$0xff] %v1028_v0  ;;  %vm3646_vm7 = vmor %vm3596_vm10, %vm4627_vm1  ;;  %v972_v0 = vadd.f32 %v3360_v21, %v971_v26  ;;  %vm4630_vm4 = vcmp.lt.s32.totalorder %v3087_v54, 80  ;;  %vm4631_vm13 = vcmp.ge.s32.totalorder %v3087_v54, 16  ;;  %v4632_v28 = vmov 0  ;;  %v2217_v7 = vpop.f32.mrf.mxu0 }
 0x15c   : > { %vm3664_vm2 = vmand %vm4631_vm13, %vm4630_vm4  ;;  %v1147_v1 = vadd.f32 %v3401_v44, %v1118_v55  ;;  %v1212_v34 = vmul.f32 %v3389_v49, %v1079_v36  ;;  %1043 = vst [vmem:[#allocation2 + $0x48] sm:$0xff] %v1031_v29  ;;  %vm4635_vm1 = vcmp.eq.s32.totalorder %v3068_v40, 95  ;;  %v1092_v60 = vmul.f32 %v3398_v62, %v1080_v48  ;;  %v1161_v29 = vld [vmem:[#allocation2 + $0x19] sm:$0xff] }
 0x15d   : > { %v4633_v28 = vsel %vm3664_vm2, 4294967295, %v4632_v28  ;;  %vm3674_vm8 = vmor %vm3611_vm14, %vm4635_vm1  ;;  %v1107_v26 = vmul.f32 %v3238_v2, %v1091_v27  ;;  %v1172_v14 = vmul.f32 %v3442_v51, %v1160_v13  ;;  %v1187_v44 = vmul.f32 %v3315_v32, %v1171_v38  ;;  %v981_v38 = vpop.f32.mrf.mxu0 }
 0x15e   : > { %4634 = vst [vmem:[#allocation28_spill] sm:$0xff] %v4633_v28  ;;  %v1030_v55 = vsel %vm3646_vm7, %v972_v0, 0.0  ;;  %v987_v40 = vadd.f32 %v2217_v7, %v3360_v21  ;;  %vm4638_vm4 = vcmp.lt.s32.totalorder %v3057_v33, 80  ;;  %vm4639_vm13 = vcmp.ge.s32.totalorder %v3057_v33, 16 }
 0x15f   : > { %vm3689_vm1 = vmand %vm4639_vm13, %vm4638_vm4  ;;  %v4640_v36 = vmov 0  ;;  %v4643_v25 = vmov 0.0   ;;  %1042 = vst [vmem:[#allocation2 + $0x40] sm:$0xff] %v1030_v55  ;;  %vm4645_vm7 = vcmp.eq.s32.totalorder %v3087_v54, 95  ;;  %v1119_v0 = vadd.f32 %v1107_v26, %v1067_v24  ;;  %v3723_v24 = vld [vmem:[#allocation2 + $0x1f] sm:$0xff] }
 0x160   : > { %v4641_v36 = vsel %vm3689_vm1, 4294967295, %v4640_v36  ;;  %v3696_v27 = vsel %vm775_vm11, 1.0, %v4643_v25  ;;  %vm3703_vm3 = vmor %vm3664_vm2, %vm4645_vm7  ;;  %v1136_v7 = vmul.f32 %v3312_v31, %v3492_v56  ;;  %v1199_v20 = vadd.f32 %v1187_v44, %v1147_v1  ;;  %v2220_v44 = vpop.f32.mrf.mxu0 }
 0x161   : > { %4642 = vst [vmem:[#allocation29_spill] sm:$0xff] %v4641_v36  ;;  %4644 = vst [vmem:[#allocation30_spill] sm:$0xff] %v3696_v27  ;;  %v1213_v25 = vmul.f32 %v3416_v3, %v1080_v48  ;;  %v3712_v27 = vsel %vm3674_vm8, %v987_v40, 0.0  ;;  %v982_v54 = vadd.f32 %v3360_v21, %v981_v38  ;;  %vm4648_vm11 = vcmp.lt.s32.totalorder %v3074_v46, 80 }
 0x162   : > { %vm4649_vm4 = vcmp.ge.s32.totalorder %v3074_v46, 16  ;;  %v1228_v1 = vmul.f32 %v3333_v30, %v1212_v34  ;;  %v1253_v26 = vmul.f32 %v3438_v17, %v1160_v13  ;;  %1045 = vst [vmem:[#allocation2 + $0x58] sm:$0xff] %v3712_v27  ;;  %vm4652_vm8 = vcmp.eq.s32.totalorder %v3057_v33, 95 }
 0x163   : > { %vm3719_vm13 = vmand %vm4649_vm4, %vm4648_vm11  ;;  %v1108_v40 = vmul.f32 %v3238_v2, %v1092_v60  ;;  %v1148_v38 = vadd.f32 %v1136_v7, %v1119_v0  ;;  %v1188_v28 = vmul.f32 %v3315_v32, %v1172_v14  ;;  %v1254_v34 = vmul.f32 %v3442_v51, %v1161_v29 }
 0x164   : > { %vm3732_vm7 = vmor %vm3689_vm1, %vm4652_vm8  ;;  %v1032_v13 = vsel %vm3703_vm3, %v982_v54, 0.0  ;;  %v997_v35 = vadd.f32 %v2220_v44, %v3360_v21  ;;  %v1240_v33 = vadd.f32 %v1228_v1, %v1199_v20  ;;  %v1269_v36 = vmul.f32 %v3355_v8, %v1253_v26  ;;  %v991_v20 = vpop.f32.mrf.mxu0 }
 0x165   : > { %vm4655_vm11 = vcmp.ne.s32.totalorder %v3352_v5, 0  ;;  %vm4656_vm4 = vcmp.lt.s32.totalorder %v3352_v5, 0  ;;  %1044 = vst [vmem:[#allocation2 + $0x50] sm:$0xff] %v1032_v13  ;;  %vm3755_vm0 = vmor %vm3719_vm13, %vm598_vm15  ;;  %v1200_v60 = vadd.f32 %v1188_v28, %v1148_v38  ;;  %v1229_v37 = vmul.f32 %v3333_v30, %v1213_v25  ;;  %v3768_v28 = vld [vmem:[#allocation2 + $0x21] sm:$0xff]  ;;  %v3770_v25 = vld [vmem:[#allocation2 + $0x70] sm:$0xff] }
 0x166   : > { %vm3747_vm8 = vmand %vm4656_vm4, %vm4655_vm11  ;;  %v1294_v0 = vmul.f32 %v3389_v49, %v1080_v48  ;;  %v1295_v7 = vmul.f32 %v3416_v3, %v3723_v24  ;;  %v1035_v54 = vsel %vm3732_vm7, %v997_v35, 0.0  ;;  %v992_v46 = vadd.f32 %v3360_v21, %v991_v20  ;;  %4661 = vst [vmem:[#allocation31_spill] sm:$0xff] %v3770_v25 }
 0x167   : > { %v1173_v1 = vmul.f32 %v3453_v18, %v1161_v29  ;;  %v1281_v26 = vadd.f32 %v1269_v36, %v1240_v33  ;;  %1047 = vst [vmem:[#allocation2 + $0x68] sm:$0xff] %v1035_v54  ;;  %v1241_v44 = vadd.f32 %v1229_v37, %v1200_v60  ;;  %v1270_v13 = vmul.f32 %v3355_v8, %v1254_v34 }
 0x168   : > { %vm4662_vm15 = vcmp.le.s32.totalorder %v3605_v4, 6  ;;  %v3781_v21 = vsel %vm3747_vm8, %v3394_v61, %v3352_v5  ;;  %v3785_v3 = vsel %vm3755_vm0, %v992_v46, 0.0  ;;  %v1310_v48 = vmul.f32 %v3375_v41, %v1294_v0  ;;  %v3796_v5 = vld [vmem:[#allocation8 + $0x8] ss:$0 sm:$0xff] }
 0x169   : > { %v3775_v49 = vsel %vm4662_vm15, 1.0, %v3770_v25  ;;  %4664 = vst [vmem:[#allocation33_spill] sm:$0xff] %v3785_v3  ;;  %v1364_v35 = vmul.f32 %v3438_v17, %v1161_v29  ;;  %v1068_v36 = vmul.f32 %v3214_v42, %v3558_v39  ;;  %vm4665_vm3 = vcmp.ne.s32.totalorder %v3276_v16, 0  ;;  %1046 = vst [vmem:[#allocation2 + $0x60] sm:$0xff] %v3785_v3 }
 0x16a   : > { %4663 = vst [vmem:[#allocation32_spill] sm:$0xff] %v3775_v49  ;;  %vm4666_vm7 = vcmp.lt.s32.totalorder %v3276_v16, 0  ;;  %v1137_v61 = vmul.f32 %v3312_v31, %v3447_v22  ;;  %v1282_v19 = vadd.f32 %v1270_v13, %v1241_v44  ;;  %v1339_v4 = vmul.f32 %v3385_v45, %v3447_v22  ;;  %v3833_v13 = vld [vmem:[%s4451_s4] ss:$0 sm:$0xff]  ;;  %v3857_v49 = vld [vmem:[#allocation2 + $0x27] sm:$0xff] }
 0x16b   : > { %vm741_vm11 = vmand %vm4666_vm7, %vm4665_vm3  ;;  %v1311_v17 = vmul.f32 %v3375_v41, %v1295_v7  ;;  %v1189_v29 = vmul.f32 %v3315_v32, %v1173_v1  ;;  %v1322_v6 = vadd.f32 %v1310_v48, %v1281_v26  ;;  %v1365_v38 = vmul.f32 %v3442_v51, %v3768_v28 }
 0x16c   : > { %v1120_v34 = vadd.f32 %v1108_v40, %v1068_v36  ;;  %v1214_v33 = vmul.f32 %v3398_v62, %v3723_v24  ;;  %v1340_v20 = vmul.f32 %v3385_v45, %v3558_v39  ;;  %v3812_v60 = vsel %vm741_vm11, %v3346_v53, %v3276_v16  ;;  %v3814_v37 = vld [vmem:[#allocation2 + $0x57] sm:$0xff]  ;;  %v3827_v53 = vld [vmem:[#allocation2 + $0x28] sm:$0xff] }
 0x16d   : > { %v1323_v14 = vadd.f32 %v1311_v17, %v1282_v19  ;;  %4667 = vst [vmem:[#allocation34_spill] sm:$0xff] %v3814_v37  ;;  %v1351_v0 = vadd.f32 %v1339_v4, %v1322_v6  ;;  %v1380_v7 = vmul.f32 %v3796_v5, %v1364_v35  ;;  %v1255_v51 = vmul.f32 %v3453_v18, %v3768_v28 }
 0x16e   : > { %v1149_v40 = vadd.f32 %v1137_v61, %v1120_v34  ;;  %v1100_v46 = vmul.f32 %v3542_v52, %v3814_v37  ;;  %v1145_v1 = vmul.f32 %v3312_v31, %v3712_v27  ;;  %v3825_v26 = vmul.f32 %v3312_v31, %v3558_v39 }
 0x16f   : > { %v1352_v16 = vadd.f32 %v1340_v20, %v1323_v14  ;;  %v1077_v44 = vmul.f32 %v3214_v42, %v1035_v54  ;;  %v1392_v48 = vadd.f32 %v1380_v7, %v1351_v0  ;;  %v1381_v35 = vmul.f32 %v3796_v5, %v1365_v38 }
 0x170   : > { %v1201_v36 = vadd.f32 %v1189_v29, %v1149_v40  ;;  %v1076_v61 = vmul.f32 %v3214_v42, %v3785_v3  ;;  %v1116_v19 = vmul.f32 %v3238_v2, %v1100_v46  ;;  %v1146_v4 = vmul.f32 %v3312_v31, %v3785_v3  ;;  %v3842_v6 = vld [vmem:[#allocation2 + $0x5f] sm:$0xff]  ;;  %v1211_v46 = vld [vmem:[#allocation2 + $0x67] sm:$0xff] }
 0x171   : > { %v1349_v17 = vmul.f32 %v3385_v45, %v1035_v54  ;;  %4668 = vst [vmem:[#allocation35_spill] sm:$0xff] %v3842_v6  ;;  %v3844_v34 = vld [vmem:[#allocation2 + $0x59] sm:$0xff]  ;;  %v3846_v14 = vld [vmem:[#allocation2 + $0x61] sm:$0xff]  ;;  %v1393_v20 = vadd.f32 %v1381_v35, %v1352_v16  ;;  %v1069_v29 = vmul.f32 %v3214_v42, %v3827_v53  ;;  %v1230_v38 = vmul.f32 %v3333_v30, %v1214_v33  ;;  %v3859_v16 = vld [vmem:[#allocation2 + $0x29] sm:$0xff] }
 0x172   : > { %4669 = vst [vmem:[#allocation36_spill] sm:$0xff] %v3844_v34  ;;  %4670 = vst [vmem:[#allocation37_spill] sm:$0xff] %v3846_v14  ;;  %v1271_v0 = vmul.f32 %v3355_v8, %v1255_v51  ;;  %v1101_v7 = vmul.f32 %v3472_v11, %v3842_v6  ;;  %v1128_v40 = vadd.f32 %v1116_v19, %v1076_v61  ;;  %vm776_vm0 = vcmp.ge.s32.totalorder %v3781_v21, 1 }
 0x173   : > { %v1181_v54 = vmul.f32 %v3546_v12, %v3844_v34  ;;  %v1411_v37 = vadd.f32 %v3833_v13, %v1392_v48  ;;  %v1182_v33 = vmul.f32 %v3476_v23, %v3846_v14  ;;  %v1222_v51 = vmul.f32 %v3542_v52, %v3842_v6 }
 0x174   : > { %v1263_v35 = vmul.f32 %v3546_v12, %v3846_v14  ;;  %v1242_v61 = vadd.f32 %v1230_v38, %v1201_v36  ;;  %v1117_v19 = vmul.f32 %v3238_v2, %v1101_v7  ;;  %v1157_v34 = vadd.f32 %v1145_v1, %v1128_v40  ;;  %v3878_v38 = vld [vmem:[#allocation2 + $0x69] sm:$0xff] }
 0x175   : > { %v1197_v48 = vmul.f32 %v3315_v32, %v1181_v54  ;;  %v1093_v63 = vmul.f32 %v3583_v59, %v3723_v24  ;;  %v1223_v43 = vmul.f32 %v3472_v11, %v1211_v46  ;;  %v1238_v15 = vmul.f32 %v3333_v30, %v1222_v51 }
 0x176   : > { %v1296_v23 = vmul.f32 %v3398_v62, %v3857_v49  ;;  %v1366_v6 = vmul.f32 %v3453_v18, %v3859_v16  ;;  %v1129_v14 = vadd.f32 %v1117_v19, %v1077_v44  ;;  %v1304_v1 = vmul.f32 %v3542_v52, %v1211_v46 }
 0x177   : > { %v1209_v36 = vadd.f32 %v1197_v48, %v1157_v34  ;;  %v3884_v24 = vsel %vm3194_vm6, %v1411_v37, %v3492_v56  ;;  %v1198_v7 = vmul.f32 %v3315_v32, %v1182_v33  ;;  %v1279_v40 = vmul.f32 %v3355_v8, %v1263_v35 }
 0x178   : > { %v3889_v62 = vmul.f32 0.70710677, %v3884_v24  ;;  %v1412_v18 = vadd.f32 %v3833_v13, %v1393_v20  ;;  %v1158_v44 = vadd.f32 %v1146_v4, %v1129_v14  ;;  %v1283_v54 = vadd.f32 %v1271_v0, %v1242_v61 }
 0x179   : > { %v1250_v34 = vadd.f32 %v1238_v15, %v1209_v36  ;;  %v1109_v51 = vmul.f32 %v3238_v2, %v1093_v63  ;;  %v1374_v52 = vmul.f32 %v3546_v12, %v3878_v38  ;;  %vm4671_vm6 = vnez %v4523_v47 }
 0x17a   : > { %v1507_v58 = vand.u32 2147483647, %v3889_v62  ;;  %v3899_v56 = vsel %vm4671_vm6, %v1412_v18, %v3447_v22  ;;  %v1312_v37 = vmul.f32 %v3375_v41, %v1296_v23  ;;  %v1210_v46 = vadd.f32 %v1198_v7, %v1158_v44 }
 0x17b   : > { %v1239_v20 = vmul.f32 %v3333_v30, %v1223_v43  ;;  %v1291_v4 = vadd.f32 %v1279_v40, %v1250_v34  ;;  %v1320_v15 = vmul.f32 %v3375_v41, %v1304_v1  ;;  %v3905_v63 = vmul.f32 0.70710677, %v3899_v56 }
 0x17c   : > { %v1519_v14 = vmul.f32 0.3275911, %v1507_v58  ;;  %v1324_v12 = vadd.f32 %v1312_v37, %v1283_v54  ;;  %v1341_v0 = vmul.f32 %v3385_v45, %v3827_v53  ;;  %v1121_v22 = vadd.f32 %v1109_v51, %v1069_v29 }
 0x17d   : > { %v3909_v33 = vadd.f32 %v1239_v20, %v1210_v46  ;;  %v1332_v47 = vadd.f32 %v1320_v15, %v1291_v4  ;;  %v1174_v23 = vmul.f32 %v3587_v57, %v3768_v28  ;;  %v1508_v43 = vand.u32 2147483647, %v3905_v63  ;;  %v3935_v20 = vld [vmem:[#allocation2 + $0x31] sm:$0xff] }
 0x17e   : > { %v1531_v35 = vadd.f32 1.0, %v1519_v14  ;;  %v1382_v61 = vmul.f32 %v3796_v5, %v1366_v6  ;;  %v3918_v19 = vsel %vm776_vm0, 1.0, %v3770_v25  ;;  %v1390_v36 = vmul.f32 %v3796_v5, %v1374_v52  ;;  %v3924_v6 = vld [vmem:[#allocation2 + $0x2f] sm:$0xff] }
 0x17f   : > { %4672 = vst [vmem:[#allocation38_spill] sm:$0xff] %v3909_v33  ;;  %v1361_v48 = vadd.f32 %v1349_v17, %v1332_v47  ;;  %v1353_v1 = vadd.f32 %v1341_v0, %v1324_v12  ;;  %v1150_v7 = vadd.f32 %v3825_v26, %v1121_v22  ;;  %v1520_v29 = vmul.f32 0.3275911, %v1508_v43 }
 0x180   : > { %2380 = vrcp.f32 %v1531_v35  ;;  %vm812_vm4 = vcmp.le.s32.totalorder %v3781_v21, 6  ;;  %vm777_vm8 = vcmp.ge.s32.totalorder %v3812_v60, 1  ;;  %v1190_v18 = vmul.f32 %v3315_v32, %v1174_v23 }
 0x181   : > { %v1402_v28 = vadd.f32 %v1390_v36, %v1361_v48  ;;  %v1394_v40 = vadd.f32 %v1382_v61, %v1353_v1  ;;  %v1215_v17 = vmul.f32 %v3583_v59, %v3857_v49  ;;  %v1663_v44 = vsub.f32 0.0, %v1507_v58 }
 0x182   : > { %v1532_v34 = vadd.f32 1.0, %v1520_v29  ;;  %v1256_v26 = vmul.f32 %v3587_v57, %v3859_v16  ;;  %vm813_vm15 = vcmp.le.s32.totalorder %v3812_v60, 6  ;;  %v1202_v52 = vadd.f32 %v1190_v18, %v1150_v7 }
 0x183   : > { %v1421_v54 = vadd.f32 %v3833_v13, %v1402_v28  ;;  %v1413_v51 = vadd.f32 %v3833_v13, %v1394_v40  ;;  %v1231_v37 = vmul.f32 %v3333_v30, %v1215_v17  ;;  %v1664_v46 = vsub.f32 0.0, %v1508_v43 }
 0x184   : > { %2382 = vrcp.f32 %v1532_v34  ;;  %v1297_v4 = vmul.f32 %v3583_v59, %v3924_v6  ;;  %v3942_v15 = vsel %vm812_vm4, 1.0, %v3770_v25  ;;  %vm4674_vm3 = vnez %v4541_v10  ;;  %v3955_v59 = vld [vmem:[#allocation2 + $0x30] sm:$0xff] }
 0x185   : > { %v3947_v14 = vsel %vm3719_vm13, %v1421_v54, %v3785_v3  ;;  %v1449_v12 = vsel %vm4674_vm3, %v1413_v51, %v3558_v39  ;;  %v1243_v0 = vadd.f32 %v1231_v37, %v1202_v52  ;;  %v1272_v47 = vmul.f32 %v3355_v8, %v1256_v26 }
 0x186   : > { %4673 = vst [vmem:[#allocation39_spill] sm:$0xff] %v3947_v14  ;;  %v1675_v22 = vmul.f32 %v1663_v44, %v1507_v58  ;;  %v3953_v23 = vmul.f32 0.70710677, %v1449_v12  ;;  %v3960_v21 = vsel %vm777_vm8, 1.0, %v3770_v25  ;;  %v3965_v55 = vsel %vm813_vm15, 1.0, %v3770_v25 }
 0x187   : > { %v3969_v10 = vmul.f32 %v3214_v42, %v3712_v27  ;;  %v1284_v39 = vadd.f32 %v1272_v47, %v1243_v0  ;;  %v1313_v58 = vmul.f32 %v3375_v41, %v1297_v4  ;;  %v1367_v35 = vmul.f32 %v3587_v57, %v3935_v20  ;;  %v4010_v0 = vld [vmem:[#allocation2 + $0x37] sm:$0xff] }
 0x188   : > { %v1676_v61 = vmul.f32 %v1664_v46, %v1508_v43  ;;  %v1139_v48 = vmul.f32 %v3312_v31, %v3827_v53  ;;  %v1509_v36 = vand.u32 2147483647, %v3953_v23  ;;  %v1094_v60 = vmul.f32 %v3617_v9, %v3857_v49 }
 0x189   : > { %vm1483_vm13 = vcmp.ge.f32.partialorder %v3889_v62, 0.0  ;;  %v1070_v1 = vmul.f32 %v3214_v42, %v3955_v59  ;;  %v1325_v7 = vadd.f32 %v1313_v58, %v1284_v39  ;;  %v1342_v29 = vmul.f32 %v3385_v45, %v3955_v59 }
 0x18a   : > { %v3985_v57 = vmul.f32 0.5, %v3884_v24  ;;  %v1687_v43 = vmul.f32 1.442695, %v1675_v22  ;;  %v1521_v28 = vmul.f32 0.3275911, %v1509_v36  ;;  %v3989_v40 = vmul.f32 %v3312_v31, %v3955_v59 }
 0x18b   : > { %v1354_v18 = vadd.f32 %v1342_v29, %v1325_v7  ;;  %v1383_v49 = vmul.f32 %v3796_v5, %v1367_v35  ;;  %v1110_v62 = vmul.f32 %v3238_v2, %v1094_v60  ;;  %v1175_v17 = vmul.f32 %v3621_v50, %v3859_v16 }
 0x18c   : > { %v4487_v44 = vmov -1.0   ;;  %v3999_v24 = vmul.f32 0.5, %v3899_v56  ;;  %v1689_v26 = vmul.f32 1.442695, %v1676_v61  ;;  %v1533_v54 = vadd.f32 1.0, %v1521_v28  ;;  %v4021_v61 = vld [vmem:[#allocation2 + $0x38] sm:$0xff] }
 0x18d   : > { %v3996_v34 = vsel %vm1483_vm13, 1.0, %v4487_v44  ;;  %v4001_v51 = vpop.eup %2380  ;;  %vm1484_vm7 = vcmp.ge.f32.partialorder %v3905_v63, 0.0  ;;  %v1395_v52 = vadd.f32 %v1383_v49, %v1354_v18  ;;  %v1122_v37 = vadd.f32 %v1110_v62, %v1070_v1  ;;  %v4676_v1 = vld [vmem:[#allocation16_spill] sm:$0xff]  ;;  %v4038_v62 = vld [vmem:[#allocation2 + $0x39] sm:$0xff] }
 0x18e   : > { %v1216_v46 = vmul.f32 %v3617_v9, %v3924_v6  ;;  %v4007_v16 = vmul.f32 0.70710677, %v3947_v14  ;;  %v1555_v4 = vmul.f32 1.0614054, %v4001_v51  ;;  %2384 = vpow2.f32 %v1687_v43 }
 0x18f   : > { %v1191_v56 = vmul.f32 %v3315_v32, %v1175_v17  ;;  %2386 = vrcp.f32 %v1533_v54  ;;  %v1414_v47 = vadd.f32 %v3833_v13, %v1395_v52  ;;  %v1151_v22 = vadd.f32 %v1139_v48, %v1122_v37  ;;  %v4679_v37 = vld [vmem:[#allocation24_spill] sm:$0xff] }
 0x190   : > { %4675 = vst [vmem:[#allocation40_spill] sm:$0xff] %v4007_v16  ;;  %v1257_v63 = vmul.f32 %v3621_v50, %v3935_v20  ;;  %v1567_v39 = vadd.f32 -1.4531521, %v1555_v4  ;;  %v4017_v58 = vsel %vm1484_vm7, 1.0, %v4487_v44  ;;  %2388 = vpow2.f32 %v1689_v26 }
 0x191   : > { %v4019_v35 = vmul.f32 0.5, %v1449_v12  ;;  %v4023_v60 = vpop.eup %2382  ;;  %vm4677_vm11 = vnez %v4676_v1  ;;  %v1203_v48 = vadd.f32 %v1191_v56, %v1151_v22  ;;  %v1232_v29 = vmul.f32 %v3333_v30, %v1216_v46 }
 0x192   : > { %v4028_v7 = vsel %vm4677_vm11, %v1414_v47, %v3827_v53  ;;  %v1298_v43 = vmul.f32 %v3617_v9, %v4010_v0  ;;  %v1579_v28 = vmul.f32 %v4001_v51, %v1567_v39  ;;  %v1556_v12 = vmul.f32 1.0614054, %v4023_v60 }
 0x193   : > { %v1665_v18 = vsub.f32 0.0, %v1509_v36  ;;  %v4036_v49 = vmul.f32 0.70710677, %v4028_v7  ;;  %v4041_v17 = vand.u32 2147483647, %v4007_v16  ;;  %v1071_v53 = vmul.f32 %v3214_v42, %v4021_v61 }
 0x194   : > { %v1244_v26 = vadd.f32 %v1232_v29, %v1203_v48  ;;  %v1273_v54 = vmul.f32 %v3355_v8, %v1257_v63  ;;  %v1591_v9 = vadd.f32 1.4214138, %v1579_v28  ;;  %v1568_v52 = vadd.f32 -1.4531521, %v1556_v12  ;;  %v4680_v12 = vld [vmem:[#allocation25_spill] sm:$0xff] }
 0x195   : > { %4678 = vst [vmem:[#allocation16_spill] sm:$0xff] %v4041_v17  ;;  %vm1485_vm0 = vcmp.ge.f32.partialorder %v3953_v23, 0.0  ;;  %v1095_v46 = vmul.f32 %v4679_v37, %v3924_v6  ;;  %v4050_v4 = vand.u32 2147483647, %v4036_v49  ;;  %v1314_v47 = vmul.f32 %v3375_v41, %v1298_v43 }
 0x196   : > { %v1285_v56 = vadd.f32 %v1273_v54, %v1244_v26  ;;  %v1368_v22 = vmul.f32 %v3621_v50, %v4038_v62  ;;  %v1603_v39 = vmul.f32 %v4001_v51, %v1591_v9  ;;  %v1580_v63 = vmul.f32 %v4023_v60, %v1568_v52 }
 0x197   : > { %v1677_v1 = vmul.f32 %v1665_v18, %v1509_v36  ;;  %v1111_v48 = vmul.f32 %v3238_v2, %v1095_v46  ;;  %v1522_v29 = vmul.f32 0.3275911, %v4050_v4  ;;  %v1343_v6 = vmul.f32 %v3385_v45, %v4021_v61 }
 0x198   : > { %v1326_v28 = vadd.f32 %v1314_v47, %v1285_v56  ;;  %v1176_v26 = vmul.f32 %v4680_v12, %v3935_v20  ;;  %v1615_v43 = vadd.f32 -0.28449672, %v1603_v39  ;;  %v1592_v54 = vadd.f32 1.4214138, %v1580_v63  ;;  %v4073_v20 = vld [vmem:[#allocation2 + $0x3f] sm:$0xff] }
 0x199   : > { %v1123_v44 = vadd.f32 %v1111_v48, %v1071_v53  ;;  %v1217_v50 = vmul.f32 %v4679_v37, %v4010_v0  ;;  %v4681_v9 = vmov -1.0   ;;  %v1534_v18 = vadd.f32 1.0, %v1522_v29 }
 0x19a   : > { %v4068_v36 = vsel %vm1485_vm0, 1.0, %v4681_v9  ;;  %v1355_v52 = vadd.f32 %v1343_v6, %v1326_v28  ;;  %v1384_v46 = vmul.f32 %v3796_v5, %v1368_v22  ;;  %v1627_v56 = vmul.f32 %v4001_v51, %v1615_v43 }
 0x19b   : > { %v1604_v47 = vmul.f32 %v4023_v60, %v1592_v54  ;;  %v1152_v53 = vadd.f32 %v3989_v40, %v1123_v44  ;;  %v1192_v39 = vmul.f32 %v3315_v32, %v1176_v26  ;;  %v2385_v63 = vpop.eup %2384  ;;  %v1691_v48 = vmul.f32 1.442695, %v1677_v1 }
 0x19c   : > { %2390 = vrcp.f32 %v1534_v18  ;;  %v1396_v23 = vadd.f32 %v1384_v46, %v1355_v52  ;;  %v1258_v29 = vmul.f32 %v4680_v12, %v4038_v62  ;;  %v4079_v28 = vpop.eup %2386  ;;  %v1639_v22 = vadd.f32 0.2548296, %v1627_v56  ;;  %v4091_v46 = vld [vmem:[#allocation2 + $0x41] sm:$0xff] }
 0x19d   : > { %v1616_v6 = vadd.f32 -0.28449672, %v1604_v47  ;;  %v1204_v43 = vadd.f32 %v1192_v39, %v1152_v53  ;;  %v1233_v54 = vmul.f32 %v3333_v30, %v1217_v50  ;;  %v2389_v14 = vpop.eup %2388  ;;  %v1557_v16 = vmul.f32 1.0614054, %v4079_v28  ;;  %v4098_v39 = vld [vmem:[#allocation2 + $0x40] sm:$0xff] }
 0x19e   : > { %v1141_v40 = vmul.f32 %v3312_v31, %v4021_v61  ;;  %v1415_v44 = vadd.f32 %v3833_v13, %v1396_v23  ;;  %v1299_v1 = vmul.f32 %v4679_v37, %v4073_v20  ;;  %v1529_v26 = vmul.f32 0.3275911, %v4041_v17 }
 0x19f   : > { %v1651_v18 = vmul.f32 %v4001_v51, %v1639_v22  ;;  %v1628_v52 = vmul.f32 %v4023_v60, %v1616_v6  ;;  %v1245_v50 = vadd.f32 %v1233_v54, %v1204_v43  ;;  %v1569_v56 = vadd.f32 -1.4531521, %v1557_v16 }
 0x1a0   : > { %2392 = vpow2.f32 %v1691_v48  ;;  %v4096_v53 = vsel %vm3499_vm5, %v1415_v44, %v3955_v59  ;;  %v1274_v37 = vmul.f32 %v3355_v8, %v1258_v29  ;;  %v1666_v51 = vsub.f32 0.0, %v4050_v4 }
 0x1a1   : > { %v1711_v23 = vmul.f32 %v2385_v63, %v1651_v18  ;;  %v1640_v17 = vadd.f32 0.2548296, %v1628_v52  ;;  %v4103_v22 = vmul.f32 0.70710677, %v4096_v53  ;;  %v1581_v6 = vmul.f32 %v4079_v28, %v1569_v56 }
 0x1a2   : > { %v1286_v16 = vadd.f32 %v1274_v37, %v1245_v50  ;;  %v1315_v48 = vmul.f32 %v3375_v41, %v1299_v1  ;;  %v1369_v59 = vmul.f32 %v4680_v12, %v4091_v46  ;;  %v1072_v63 = vmul.f32 %v3214_v42, %v4098_v39  ;;  %v4683_v50 = vld [vmem:[#allocation26_spill] sm:$0xff] }
 0x1a3   : > { %v1723_v43 = vsub.f32 1.0, %v1711_v23  ;;  %v1652_v54 = vmul.f32 %v4023_v60, %v1640_v17  ;;  %v1511_v29 = vand.u32 2147483647, %v4103_v22  ;;  %v1593_v44 = vadd.f32 1.4214138, %v1581_v6 }
 0x1a4   : > { %v1327_v18 = vadd.f32 %v1315_v48, %v1286_v16  ;;  %v1344_v52 = vmul.f32 %v3385_v45, %v4098_v39  ;;  %v1096_v56 = vmul.f32 %v4683_v50, %v4010_v0  ;;  %v1678_v12 = vmul.f32 %v1666_v51, %v4050_v4 }
 0x1a5   : > { %v1735_v1 = vmul.f32 %v1723_v43, %v3996_v34  ;;  %v1712_v47 = vmul.f32 %v2389_v14, %v1652_v54  ;;  %v1523_v37 = vmul.f32 0.3275911, %v1511_v29  ;;  %v1605_v60 = vmul.f32 %v4079_v28, %v1593_v44  ;;  %v4684_v34 = vld [vmem:[#allocation27_spill] sm:$0xff] }
 0x1a6   : > { %v1356_v17 = vadd.f32 %v1344_v52, %v1327_v18  ;;  %v1385_v23 = vmul.f32 %v3796_v5, %v1369_v59  ;;  %v1112_v6 = vmul.f32 %v3238_v2, %v1096_v56  ;;  %v1541_v16 = vadd.f32 1.0, %v1529_v26 }
 0x1a7   : > { %v1747_v48 = vadd.f32 1.0, %v1735_v1  ;;  %v1724_v25 = vsub.f32 1.0, %v1712_v47  ;;  %v1535_v11 = vadd.f32 1.0, %v1523_v37  ;;  %v1617_v33 = vadd.f32 -0.28449672, %v1605_v60 }
 0x1a8   : > { %v1397_v3 = vadd.f32 %v1385_v23, %v1356_v17  ;;  %v1124_v0 = vadd.f32 %v1112_v6, %v1072_v63  ;;  %v1177_v14 = vmul.f32 %v4684_v34, %v4038_v62  ;;  %v1693_v54 = vmul.f32 1.442695, %v1678_v12 }
 0x1a9   : > { %v4124_v43 = vpop.eup %2390  ;;  %v1759_v4 = vmul.f32 %v1747_v48, %v3985_v57  ;;  %v1736_v51 = vmul.f32 %v1724_v25, %v4017_v58  ;;  %2394 = vrcp.f32 %v1535_v11  ;;  %v1629_v59 = vmul.f32 %v4079_v28, %v1617_v33  ;;  %v4140_v58 = vld [vmem:[#allocation2 + $0x47] sm:$0xff] }
 0x1aa   : > { %v1558_v26 = vmul.f32 1.0614054, %v4124_v43  ;;  %v1416_v44 = vadd.f32 %v3833_v13, %v1397_v3  ;;  %v1153_v18 = vadd.f32 %v1141_v40, %v1124_v0  ;;  %vm1486_vm5 = vcmp.ge.f32.partialorder %v4036_v49, 0.0 }
 0x1ab   : > { %2253 = vmatprep.mubr.f32.mxu1 %v1759_v4  ;;  %v1748_v63 = vadd.f32 1.0, %v1736_v51  ;;  %v1193_v62 = vmul.f32 %v3315_v32, %v1177_v14  ;;  %v1218_v57 = vmul.f32 %v4683_v50, %v4073_v20  ;;  %v1641_v52 = vadd.f32 0.2548296, %v1629_v59 }
 0x1ac   : > { %v1570_v25 = vadd.f32 -1.4531521, %v1558_v26  ;;  %v4138_v33 = vsel %vm3430_vm12, %v1416_v44, %v4021_v61  ;;  %v1259_v3 = vmul.f32 %v4684_v34, %v4091_v46  ;;  %v1667_v1 = vsub.f32 0.0, %v1511_v29 }
 0x1ad   : > { %v2393_v40 = vpop.eup %2392  ;;  %v1760_v56 = vmul.f32 %v1748_v63, %v3999_v24  ;;  %v4146_v47 = vmul.f32 0.70710677, %v4138_v33  ;;  %v1205_v12 = vadd.f32 %v1193_v62, %v1153_v18  ;;  %v1653_v37 = vmul.f32 %v4079_v28, %v1641_v52  ;;  %v4155_v24 = vld [vmem:[#allocation2 + $0x49] sm:$0xff]  ;;  %v4686_v62 = vld [vmem:[#allocation30_spill] sm:$0xff] }
 0x1ae   : > { %v1582_v60 = vmul.f32 %v4124_v43, %v1570_v25  ;;  %2396 = vpow2.f32 %v1693_v54  ;;  %v1234_v61 = vmul.f32 %v3333_v30, %v1218_v57  ;;  %v4152_v17 = vmul.f32 0.5, %v4028_v7  ;;  %v4159_v28 = vld [vmem:[#allocation2 + $0x48] sm:$0xff] }
 0x1af   : > { %2398 = vrcp.f32 %v1541_v16  ;;  %2254 = vmatmul.mubr.f32.vlgmr.msra.gmra.mxu1 %v1760_v56  ;;  %v1512_v23 = vand.u32 2147483647, %v4146_v47  ;;  %v1300_v6 = vmul.f32 %v4683_v50, %v4140_v58  ;;  %v1713_v48 = vmul.f32 %v2393_v40, %v1653_v37  ;;  %v4687_v40 = vld [vmem:[#allocation32_spill] sm:$0xff] }
 0x1b0   : > { %v1594_v0 = vadd.f32 1.4214138, %v1582_v60  ;;  %v1246_v14 = vadd.f32 %v1234_v61, %v1205_v12  ;;  %v1275_v4 = vmul.f32 %v3355_v8, %v1259_v3  ;;  %v4165_v16 = vsel %vm1486_vm5, 1.0, %v4681_v9 }
 0x1b1   : > { %v1679_v7 = vmul.f32 %v1667_v1, %v1511_v29  ;;  %v1524_v51 = vmul.f32 0.3275911, %v1512_v23  ;;  %v1316_v54 = vmul.f32 %v3375_v41, %v1300_v6  ;;  %v1725_v59 = vsub.f32 1.0, %v1713_v48  ;;  %v4190_v6 = vld [vmem:[#allocation2 + $0x50] sm:$0xff] }
 0x1b2   : > { %v1606_v26 = vmul.f32 %v4124_v43, %v1594_v0  ;;  %v1287_v50 = vadd.f32 %v1275_v4, %v1246_v14  ;;  %v1370_v44 = vmul.f32 %v4684_v34, %v4155_v24  ;;  %v1142_v18 = vmul.f32 %v3312_v31, %v4098_v39 }
 0x1b3   : > { %v1536_v63 = vadd.f32 1.0, %v1524_v51  ;;  %v1073_v49 = vmul.f32 %v3214_v42, %v4159_v28  ;;  %v1097_v29 = vmul.f32 %v4686_v62, %v4073_v20  ;;  %v1737_v57 = vmul.f32 %v1725_v59, %v4068_v36  ;;  %v4195_v51 = vld [vmem:[#allocation2 + $0x4f] sm:$0xff] }
 0x1b4   : > { %v1618_v52 = vadd.f32 -0.28449672, %v1606_v26  ;;  %v1328_v25 = vadd.f32 %v1316_v54, %v1287_v50  ;;  %v1345_v11 = vmul.f32 %v3385_v45, %v4159_v28  ;;  %v1695_v3 = vmul.f32 1.442695, %v1679_v7 }
 0x1b5   : > { %2400 = vrcp.f32 %v1536_v63  ;;  %v1113_v34 = vmul.f32 %v3238_v2, %v1097_v29  ;;  %v1178_v56 = vmul.f32 %v4687_v40, %v4091_v46  ;;  %v1749_v12 = vadd.f32 1.0, %v1737_v57 }
 0x1b6   : > { %v4183_v1 = vpop.eup %2394  ;;  %v1630_v37 = vmul.f32 %v4124_v43, %v1618_v52  ;;  %v1357_v20 = vadd.f32 %v1345_v11, %v1328_v25  ;;  %v1386_v36 = vmul.f32 %v3796_v5, %v1370_v44  ;;  %v1143_v61 = vmul.f32 %v3312_v31, %v4159_v28 }
 0x1b7   : > { %v1559_v60 = vmul.f32 1.0614054, %v4183_v1  ;;  %v1125_v48 = vadd.f32 %v1113_v34, %v1073_v49  ;;  %v1219_v0 = vmul.f32 %v4686_v62, %v4140_v58  ;;  %v1761_v46 = vmul.f32 %v1749_v12, %v4019_v35 }
 0x1b8   : > { %v1642_v14 = vadd.f32 0.2548296, %v1630_v37  ;;  %v1668_v4 = vsub.f32 0.0, %v1512_v23  ;;  %v1398_v7 = vadd.f32 %v1386_v36, %v1357_v20  ;;  %v1194_v26 = vmul.f32 %v3315_v32, %v1178_v56 }
 0x1b9   : > { %v1571_v54 = vadd.f32 -1.4531521, %v1559_v60  ;;  %v1154_v59 = vadd.f32 %v1142_v18, %v1125_v48  ;;  %v1260_v50 = vmul.f32 %v4687_v40, %v4155_v24  ;;  %2256 = vmatprep.mubr.f32.mxu1 %v1761_v46  ;;  %vm1487_vm12 = vcmp.ge.f32.partialorder %v4103_v22, 0.0  ;;  %v4206_v18 = vld [vmem:[#allocation2 + $0x51] sm:$0xff] }
 0x1ba   : > { %v1654_v44 = vmul.f32 %v4124_v43, %v1642_v14  ;;  %2402 = vpow2.f32 %v1695_v3  ;;  %v1417_v35 = vadd.f32 %v3833_v13, %v1398_v7  ;;  %v1074_v63 = vmul.f32 %v3214_v42, %v4190_v6 }
 0x1bb   : > { %v2397_v49 = vpop.eup %2396  ;;  %v1583_v29 = vmul.f32 %v4183_v1, %v1571_v54  ;;  %v1206_v57 = vadd.f32 %v1194_v26, %v1154_v59  ;;  %v1235_v52 = vmul.f32 %v3333_v30, %v1219_v0  ;;  %v1301_v25 = vmul.f32 %v4686_v62, %v4195_v51 }
 0x1bc   : > { %v4211_v43 = vpop.eup %2398  ;;  %v1714_v11 = vmul.f32 %v2397_v49, %v1654_v44  ;;  %v1680_v3 = vmul.f32 %v1668_v4, %v1512_v23  ;;  %v4216_v56 = vsel %vm3596_vm10, %v1417_v35, %v4098_v39  ;;  %v1098_v42 = vmul.f32 %v3918_v19, %v4140_v58 }
 0x1bd   : > { %v1595_v12 = vadd.f32 1.4214138, %v1583_v29  ;;  %v4221_v37 = vmul.f32 0.70710677, %v4216_v56  ;;  %v1247_v20 = vadd.f32 %v1235_v52, %v1206_v57  ;;  %v1276_v36 = vmul.f32 %v3355_v8, %v1260_v50 }
 0x1be   : > { %v1726_v62 = vsub.f32 1.0, %v1714_v11  ;;  %v1371_v60 = vmul.f32 %v4687_v40, %v4206_v18  ;;  %v1114_v23 = vmul.f32 %v3238_v2, %v1098_v42  ;;  %v1179_v39 = vmul.f32 %v3942_v15, %v4155_v24 }
 0x1bf   : > { %v1607_v48 = vmul.f32 %v4183_v1, %v1595_v12  ;;  %v4231_v58 = vand.u32 2147483647, %v4221_v37  ;;  %v1288_v0 = vadd.f32 %v1276_v36, %v1247_v20  ;;  %v1317_v46 = vmul.f32 %v3375_v41, %v1301_v25 }
 0x1c0   : > { %v1738_v14 = vmul.f32 %v1726_v62, %v4165_v16  ;;  %v1697_v4 = vmul.f32 1.442695, %v1680_v3  ;;  %v1126_v7 = vadd.f32 %v1114_v23, %v1074_v63  ;;  %v1220_v40 = vmul.f32 %v3918_v19, %v4195_v51  ;;  %v4689_v23 = vld [vmem:[#allocation34_spill] sm:$0xff] }
 0x1c1   : > { %v1619_v54 = vadd.f32 -0.28449672, %v1607_v48  ;;  %v1525_v59 = vmul.f32 0.3275911, %v4231_v58  ;;  %v1329_v26 = vadd.f32 %v1317_v46, %v1288_v0  ;;  %v1346_v24 = vmul.f32 %v3385_v45, %v4190_v6  ;;  %v4690_v0 = vld [vmem:[#allocation36_spill] sm:$0xff] }
 0x1c2   : > { %v4240_v50 = vpop.eup %2400  ;;  %v1750_v44 = vadd.f32 1.0, %v1738_v14  ;;  %v1155_v35 = vadd.f32 %v1143_v61, %v1126_v7  ;;  %v1195_v49 = vmul.f32 %v3315_v32, %v1179_v39  ;;  %v1261_v16 = vmul.f32 %v3942_v15, %v4206_v18 }
 0x1c3   : > { %v1631_v63 = vmul.f32 %v4183_v1, %v1619_v54  ;;  %v1560_v29 = vmul.f32 1.0614054, %v4240_v50  ;;  %v1537_v57 = vadd.f32 1.0, %v1525_v59  ;;  %v1387_v52 = vmul.f32 %v3796_v5, %v1371_v60 }
 0x1c4   : > { %v1762_v25 = vmul.f32 %v1750_v44, %v4152_v17  ;;  %v1358_v11 = vadd.f32 %v1346_v24, %v1329_v26  ;;  %v1207_v3 = vadd.f32 %v1195_v49, %v1155_v35  ;;  %v1236_v34 = vmul.f32 %v3333_v30, %v1220_v40 }
 0x1c5   : > { %v1499_v61 = vsel %vm1487_vm12, 1.0, %v4681_v9  ;;  %v1643_v42 = vadd.f32 0.2548296, %v1631_v63  ;;  %v1572_v12 = vadd.f32 -1.4531521, %v1560_v29  ;;  %2404 = vrcp.f32 %v1537_v57 }
 0x1c6   : > { %2257 = vmatmul.mubr.f32.gmra.mxu1 %v1762_v25  ;;  %v1399_v20 = vadd.f32 %v1387_v52, %v1358_v11  ;;  %v1248_v36 = vadd.f32 %v1236_v34, %v1207_v3  ;;  %v1277_v62 = vmul.f32 %v3355_v8, %v1261_v16  ;;  %v1302_v60 = vmul.f32 %v3918_v19, %v4689_v23 }
 0x1c7   : > { %v2403_v17 = vpop.eup %2402  ;;  %v1655_v39 = vmul.f32 %v4183_v1, %v1643_v42  ;;  %v1584_v48 = vmul.f32 %v4240_v50, %v1572_v12  ;;  %2406 = vpow2.f32 %v1697_v4  ;;  %v1372_v22 = vmul.f32 %v3942_v15, %v4690_v0 }
 0x1c8   : > { %v1418_v46 = vadd.f32 %v3833_v13, %v1399_v20  ;;  %v1289_v14 = vadd.f32 %v1277_v62, %v1248_v36  ;;  %v1318_v7 = vmul.f32 %v3375_v41, %v1302_v60  ;;  %v1099_v40 = vmul.f32 %v3960_v21, %v4195_v51  ;;  %v4692_v36 = vld [vmem:[#allocation35_spill] sm:$0xff] }
 0x1c9   : > { %v1715_v54 = vmul.f32 %v2403_v17, %v1655_v39  ;;  %v1596_v59 = vadd.f32 1.4214138, %v1584_v48  ;;  %v1144_v19 = vmul.f32 %v3312_v31, %v4190_v6  ;;  %v1347_v1 = vmul.f32 %v3385_v45, %v3712_v27 }
 0x1ca   : > { %v4271_v15 = vsel %vm3527_vm9, %v1418_v46, %v4159_v28  ;;  %v1330_v26 = vadd.f32 %v1318_v7, %v1289_v14  ;;  %v1115_v24 = vmul.f32 %v3238_v2, %v1099_v40  ;;  %v1180_v44 = vmul.f32 %v3965_v55, %v4206_v18 }
 0x1cb   : > { %v1727_v51 = vsub.f32 1.0, %v1715_v54  ;;  %v1608_v35 = vmul.f32 %v4240_v50, %v1596_v59  ;;  %v1669_v49 = vsub.f32 0.0, %v4231_v58  ;;  %v4279_v31 = vmul.f32 0.70710677, %v4271_v15  ;;  %v4695_v59 = vld [vmem:[#allocation37_spill] sm:$0xff] }
 0x1cc   : > { %v1359_v27 = vadd.f32 %v1347_v1, %v1330_v26  ;;  %v1388_v16 = vmul.f32 %v3796_v5, %v1372_v22  ;;  %v1127_v28 = vadd.f32 %v1115_v24, %v3969_v10  ;;  %v1221_v63 = vmul.f32 %v3960_v21, %v4689_v23  ;;  %v4693_v23 = vld [vmem:[#allocation19_spill] sm:$0xff]  ;;  %v4696_v26 = vld [vmem:[#allocation33_spill] sm:$0xff] }
 0x1cd   : > { %v1463_v2 = vmul.f32 0.5, %v4096_v53  ;;  %v1739_v29 = vmul.f32 %v1727_v51, %v1499_v61  ;;  %v1620_v18 = vadd.f32 -0.28449672, %v1608_v35  ;;  %v1514_v57 = vand.u32 2147483647, %v4279_v31  ;;  %v1293_v51 = vld [vmem:[#allocation2 + $0x6f] sm:$0xff] }
 0x1ce   : > { %v1400_v52 = vadd.f32 %v1388_v16, %v1359_v27  ;;  %v1156_v25 = vadd.f32 %v1144_v19, %v1127_v28  ;;  %v1196_v11 = vmul.f32 %v3315_v32, %v1180_v44  ;;  %v1262_v3 = vmul.f32 %v3965_v55, %v4690_v0 }
 0x1cf   : > { %v1751_v34 = vadd.f32 1.0, %v1739_v29  ;;  %v1632_v42 = vmul.f32 %v4240_v50, %v1620_v18  ;;  %v1681_v10 = vmul.f32 %v1669_v49, %v4231_v58  ;;  %v1526_v12 = vmul.f32 0.3275911, %v1514_v57  ;;  %v4697_v29 = vld [vmem:[#allocation38_spill] sm:$0xff] }
 0x1d0   : > { %v1419_v20 = vadd.f32 %v3833_v13, %v1400_v52  ;;  %v1208_v53 = vadd.f32 %v1196_v11, %v1156_v25  ;;  %v1237_v61 = vmul.f32 %v3333_v30, %v1221_v63  ;;  %v1303_v62 = vmul.f32 %v3960_v21, %v4692_v36  ;;  %v4698_v52 = vld [vmem:[#allocation18_spill] sm:$0xff] }
 0x1d1   : > { %v1264_v32 = vmul.f32 %v4693_v23, %v3878_v38  ;;  %v1763_v60 = vmul.f32 %v1751_v34, %v1463_v2  ;;  %v1644_v17 = vadd.f32 0.2548296, %v1632_v42  ;;  %v1538_v39 = vadd.f32 1.0, %v1526_v12  ;;  %v1363_v42 = vld [vmem:[#allocation2 + $0x71] sm:$0xff] }
 0x1d2   : > { %v4298_v48 = vpop.eup %2404  ;;  %vm1488_vm9 = vcmp.ge.f32.partialorder %v4146_v47, 0.0  ;;  %v4304_v0 = vsel %vm3664_vm2, %v1419_v20, %v4190_v6  ;;  %v1249_v22 = vadd.f32 %v1237_v61, %v1208_v53  ;;  %v1278_v30 = vmul.f32 %v3355_v8, %v1262_v3  ;;  %v4699_v53 = vld [vmem:[#allocation31_spill] sm:$0xff] }
 0x1d3   : > { %2259 = vmatprep.mubr.f32.mxu1 %v1763_v60  ;;  %v1656_v21 = vmul.f32 %v4240_v50, %v1644_v17  ;;  %v1561_v38 = vmul.f32 1.0614054, %v4298_v48  ;;  %v1699_v46 = vmul.f32 1.442695, %v1681_v10  ;;  %2408 = vrcp.f32 %v1538_v39  ;;  %v2429_v39 = vld [vmem:[#allocation2 + $0x58] sm:$0xff] }
 0x1d4   : > { %v2407_v14 = vpop.eup %2406  ;;  %v4310_v7 = vmul.f32 0.70710677, %v4304_v0  ;;  %v1290_v40 = vadd.f32 %v1278_v30, %v1249_v22  ;;  %v1319_v54 = vmul.f32 %v3375_v41, %v1303_v62  ;;  %v1373_v6 = vmul.f32 %v3965_v55, %v4695_v59 }
 0x1d5   : > { %v1716_v19 = vmul.f32 %v2407_v14, %v1656_v21  ;;  %v1573_v1 = vadd.f32 -1.4531521, %v1561_v38  ;;  %v1280_v4 = vmul.f32 %v3355_v8, %v1264_v32  ;;  %v1348_v50 = vmul.f32 %v3385_v45, %v4696_v26  ;;  %v4701_v26 = vld [vmem:[#allocation16_spill] sm:$0xff] }
 0x1d6   : > { %v1515_v24 = vand.u32 2147483647, %v4310_v7  ;;  %v1331_v44 = vadd.f32 %v1319_v54, %v1290_v40  ;;  %v1500_v35 = vsel %vm1488_vm9, 1.0, %v4681_v9  ;;  %2410 = vpow2.f32 %v1699_v46 }
 0x1d7   : > { %v1728_v49 = vsub.f32 1.0, %v1716_v19  ;;  %v1585_v27 = vmul.f32 %v4298_v48, %v1573_v1  ;;  %v1670_v55 = vsub.f32 0.0, %v1514_v57  ;;  %v1389_v8 = vmul.f32 %v3796_v5, %v1373_v6 }
 0x1d8   : > { %v1527_v16 = vmul.f32 0.3275911, %v1515_v24  ;;  %v1360_v28 = vadd.f32 %v1348_v50, %v1331_v44  ;;  %v1292_v18 = vadd.f32 %v1280_v4, %v4697_v29  ;;  %v1305_v25 = vmul.f32 %v4698_v52, %v1293_v51 }
 0x1d9   : > { %v1740_v63 = vmul.f32 %v1728_v49, %v1500_v35  ;;  %v1597_v2 = vadd.f32 1.4214138, %v1585_v27  ;;  %v1464_v11 = vmul.f32 0.5, %v4138_v33  ;;  %v1565_v34 = vmul.f32 1.0614054, %v4211_v43 }
 0x1da   : > { %v1539_v3 = vadd.f32 1.0, %v1527_v16  ;;  %v1401_v47 = vadd.f32 %v1389_v8, %v1360_v28  ;;  %v1321_v20 = vmul.f32 %v3375_v41, %v1305_v25  ;;  %v1350_v61 = vmul.f32 %v4699_v53, %v3385_v45  ;;  %v2430_v16 = vld [vmem:[#allocation2 + $0x68] sm:$0xff] }
 0x1db   : > { %v1752_v10 = vadd.f32 1.0, %v1740_v63  ;;  %v1609_v12 = vmul.f32 %v4298_v48, %v1597_v2  ;;  %v1682_v36 = vmul.f32 %v1670_v55, %v1514_v57  ;;  %v1375_v17 = vmul.f32 %v4693_v23, %v1363_v42 }
 0x1dc   : > { %2412 = vrcp.f32 %v1539_v3  ;;  %v1420_v62 = vadd.f32 %v3833_v13, %v1401_v47  ;;  %v1333_v33 = vadd.f32 %v1321_v20, %v1292_v18  ;;  %v1577_v30 = vadd.f32 -1.4531521, %v1565_v34 }
 0x1dd   : > { %v1764_v32 = vmul.f32 %v1752_v10, %v1464_v11  ;;  %v1621_v60 = vadd.f32 -0.28449672, %v1609_v12  ;;  %v1391_v38 = vmul.f32 %v3796_v5, %v1375_v17  ;;  %v1701_v40 = vmul.f32 1.442695, %v1682_v36 }
 0x1de   : > { %v4336_v22 = vsel %vm3611_vm14, %v1420_v62, %v2429_v39  ;;  %v1362_v57 = vadd.f32 %v1350_v61, %v1333_v33  ;;  %v1671_v23 = vsub.f32 0.0, %v1515_v24  ;;  %v1589_v59 = vmul.f32 %v4211_v43, %v1577_v30 }
 0x1df   : > { %2260 = vmatmul.mubr.f32.gmra.mxu1 %v1764_v32  ;;  %v1633_v41 = vmul.f32 %v4298_v48, %v1621_v60  ;;  %v4340_v45 = vmul.f32 0.70710677, %v4336_v22  ;;  %v1673_v50 = vsub.f32 0.0, %v4701_v26  ;;  %vm1489_vm10 = vcmp.ge.f32.partialorder %v4221_v37, 0.0 }
 0x1e0   : > { %v2409_v21 = vpop.eup %2408  ;;  %v1403_v6 = vadd.f32 %v1391_v38, %v1362_v57  ;;  %2414 = vpow2.f32 %v1701_v40  ;;  %v1683_v49 = vmul.f32 %v1671_v23, %v1515_v24  ;;  %v1601_v55 = vadd.f32 1.4214138, %v1589_v59 }
 0x1e1   : > { %v1645_v46 = vadd.f32 0.2548296, %v1633_v41  ;;  %v1562_v14 = vmul.f32 1.0614054, %v2409_v21  ;;  %v1516_v54 = vand.u32 2147483647, %v4340_v45  ;;  %v1685_v29 = vmul.f32 %v1673_v50, %v4701_v26 }
 0x1e2   : > { %v1422_v51 = vadd.f32 %v3833_v13, %v1403_v6  ;;  %v1501_v13 = vsel %vm1489_vm10, 1.0, %v4681_v9  ;;  %v1465_v25 = vmul.f32 0.5, %v4216_v56  ;;  %v1703_v3 = vmul.f32 1.442695, %v1683_v49 }
 0x1e3   : > { %v1657_v19 = vmul.f32 %v4298_v48, %v1645_v46  ;;  %v1574_v1 = vadd.f32 -1.4531521, %v1562_v14  ;;  %v2411_v4 = vpop.eup %2410  ;;  %v1528_v44 = vmul.f32 0.3275911, %v1516_v54  ;;  %v1613_v42 = vmul.f32 %v4211_v43, %v1601_v55 }
 0x1e4   : > { %v4351_v8 = vsel %vm3689_vm1, %v1422_v51, %v2430_v16  ;;  %v1707_v20 = vmul.f32 1.442695, %v1685_v29  ;;  %v1672_v32 = vsub.f32 0.0, %v1516_v54  ;;  %vm1490_vm14 = vcmp.ge.f32.partialorder %v4279_v31, 0.0 }
 0x1e5   : > { %v1717_v5 = vmul.f32 %v2411_v4, %v1657_v19  ;;  %v1586_v35 = vmul.f32 %v2409_v21, %v1574_v1  ;;  %v1540_v27 = vadd.f32 1.0, %v1528_v44  ;;  %v4354_v2 = vmul.f32 0.70710677, %v4351_v8 }
 0x1e6   : > { %v1625_v33 = vadd.f32 -0.28449672, %v1613_v42  ;;  %v1684_v30 = vmul.f32 %v1672_v32, %v1516_v54  ;;  %v1502_v23 = vsel %vm1490_vm14, 1.0, %v4681_v9  ;;  %v1466_v54 = vmul.f32 0.5, %v4271_v15 }
 0x1e7   : > { %v1729_v48 = vsub.f32 1.0, %v1717_v5  ;;  %v1598_v63 = vadd.f32 1.4214138, %v1586_v35  ;;  %2416 = vrcp.f32 %v1540_v27  ;;  %v1518_v52 = vand.u32 2147483647, %v4354_v2 }
 0x1e8   : > { %2418 = vpow2.f32 %v1703_v3  ;;  %v1637_v57 = vmul.f32 %v4211_v43, %v1625_v33  ;;  %v1705_v19 = vmul.f32 1.442695, %v1684_v30  ;;  %vm1491_vm2 = vcmp.ge.f32.partialorder %v4310_v7, 0.0  ;;  %v4703_v3 = vld [vmem:[#allocation40_spill] sm:$0xff] }
 0x1e9   : > { %v2413_v37 = vpop.eup %2412  ;;  %v1741_v18 = vmul.f32 %v1729_v48, %v1501_v13  ;;  %v1610_v24 = vmul.f32 %v2409_v21, %v1598_v63  ;;  %v1530_v10 = vmul.f32 0.3275911, %v1518_v52  ;;  %v1674_v40 = vsub.f32 0.0, %v1518_v52 }
 0x1ea   : > { %v1563_v11 = vmul.f32 1.0614054, %v2413_v37  ;;  %v1649_v4 = vadd.f32 0.2548296, %v1637_v57  ;;  %v1503_v29 = vsel %vm1491_vm2, 1.0, %v4681_v9  ;;  %vm1493_vm1 = vcmp.ge.f32.partialorder %v4703_v3, 0.0 }
 0x1eb   : > { %v1753_v47 = vadd.f32 1.0, %v1741_v18  ;;  %v1622_v34 = vadd.f32 -0.28449672, %v1610_v24  ;;  %v1542_v36 = vadd.f32 1.0, %v1530_v10  ;;  %v1686_v31 = vmul.f32 %v1674_v40, %v1518_v52 }
 0x1ec   : > { %v1575_v12 = vadd.f32 -1.4531521, %v1563_v11  ;;  %v1661_v49 = vmul.f32 %v4211_v43, %v1649_v4  ;;  %v1467_v43 = vmul.f32 0.5, %v4304_v0  ;;  %vm1492_vm6 = vcmp.ge.f32.partialorder %v4340_v45, 0.0 }
 0x1ed   : > { %v1765_v53 = vmul.f32 %v1753_v47, %v1465_v25  ;;  %v1634_v61 = vmul.f32 %v2409_v21, %v1622_v34  ;;  %2420 = vrcp.f32 %v1542_v36  ;;  %v2415_v39 = vpop.eup %2414  ;;  %v1709_v48 = vmul.f32 1.442695, %v1686_v31 }
 0x1ee   : > { %v1587_v62 = vmul.f32 %v2413_v37, %v1575_v12  ;;  %2422 = vpow2.f32 %v1707_v20  ;;  %v1504_v33 = vsel %vm1492_vm6, 1.0, %v4681_v9  ;;  %vm1494_vm4 = vcmp.ge.f32.partialorder %v4354_v2, 0.0 }
 0x1ef   : > { %2262 = vmatprep.mubr.f32.mxu1 %v1765_v53  ;;  %v1646_v60 = vadd.f32 0.2548296, %v1634_v61  ;;  %2424 = vpow2.f32 %v1705_v19  ;;  %v1505_v53 = vsel %vm1493_vm1, 1.0, %v4681_v9  ;;  %v1470_v19 = vmul.f32 0.5, %v4351_v8 }
 0x1f0   : > { %v1599_v56 = vadd.f32 1.4214138, %v1587_v62  ;;  %2426 = vpow2.f32 %v1709_v48 }
 0x1f1   : > { %v1658_v17 = vmul.f32 %v2409_v21, %v1646_v60 }
 0x1f2   : > { %v1611_v58 = vmul.f32 %v2413_v37, %v1599_v56 }
 0x1f3   : > { %v1718_v41 = vmul.f32 %v2415_v39, %v1658_v17 }
 0x1f4   : > { %v1623_v38 = vadd.f32 -0.28449672, %v1611_v58  ;;  %v2417_v46 = vpop.eup %2416  ;;  %v4704_v58 = vld [vmem:[#allocation39_spill] sm:$0xff] }
 0x1f5   : > { %v1730_v14 = vsub.f32 1.0, %v1718_v41  ;;  %v1564_v6 = vmul.f32 1.0614054, %v2417_v46  ;;  %v2419_v5 = vpop.eup %2418  ;;  %v1469_v30 = vmul.f32 0.5, %v4704_v58 }
 0x1f6   : > { %v1635_v59 = vmul.f32 %v2413_v37, %v1623_v38  ;;  %v1468_v38 = vmul.f32 0.5, %v4336_v22  ;;  %v2109_v22 = vld [vmem:[%s4453_s6] ss:$0 sm:$0xff] }
 0x1f7   : > { %v1742_v1 = vmul.f32 %v1730_v14, %v1502_v23  ;;  %v1576_v26 = vadd.f32 -1.4531521, %v1564_v6 }
 0x1f8   : > { %v1647_v21 = vadd.f32 0.2548296, %v1635_v59  ;;  %v1506_v59 = vsel %vm1494_vm4, 1.0, %v4681_v9 }
 0x1f9   : > { %v1754_v50 = vadd.f32 1.0, %v1742_v1  ;;  %v1588_v51 = vmul.f32 %v2417_v46, %v1576_v26 }
 0x1fa   : > { %v1659_v44 = vmul.f32 %v2413_v37, %v1647_v21  ;;  %v2421_v27 = vpop.eup %2420 }
 0x1fb   : > { %v1766_v35 = vmul.f32 %v1754_v50, %v1466_v54  ;;  %v1600_v16 = vadd.f32 1.4214138, %v1588_v51  ;;  %v1566_v28 = vmul.f32 1.0614054, %v2421_v27  ;;  %v2423_v63 = vpop.eup %2422 }
 0x1fc   : > { %v1719_v55 = vmul.f32 %v2419_v5, %v1659_v44  ;;  %v1721_v37 = vmul.f32 %v2423_v63, %v1661_v49  ;;  %v2425_v61 = vpop.eup %2424 }
 0x1fd   : > { %2263 = vmatmul.mubr.f32.gmra.mxu1 %v1766_v35  ;;  %v1612_v15 = vmul.f32 %v2417_v46, %v1600_v16  ;;  %v1578_v18 = vadd.f32 -1.4531521, %v1566_v28  ;;  %v2427_v57 = vpop.eup %2426 }
 0x1fe   : > { %v1731_v13 = vsub.f32 1.0, %v1719_v55  ;;  %v1733_v47 = vsub.f32 1.0, %v1721_v37 }
 0x1ff   : > { %v1624_v52 = vadd.f32 -0.28449672, %v1612_v15  ;;  %v1590_v25 = vmul.f32 %v2421_v27, %v1578_v18 }
 0x200   : > { %v1743_v24 = vmul.f32 %v1731_v13, %v1503_v29  ;;  %v1745_v36 = vmul.f32 %v1733_v47, %v1505_v53 }
 0x201   : > { %v1636_v7 = vmul.f32 %v2417_v46, %v1624_v52  ;;  %v1602_v34 = vadd.f32 1.4214138, %v1590_v25 }
 0x202   : > { %v1755_v11 = vadd.f32 1.0, %v1743_v24  ;;  %v1757_v56 = vadd.f32 1.0, %v1745_v36 }
 0x203   : > { %v1648_v10 = vadd.f32 0.2548296, %v1636_v7  ;;  %v1614_v12 = vmul.f32 %v2421_v27, %v1602_v34 }
 0x204   : > { %v1767_v42 = vmul.f32 %v1755_v11, %v1467_v43  ;;  %v1769_v14 = vmul.f32 %v1757_v56, %v1469_v30 }
 0x205   : > { %v1660_v20 = vmul.f32 %v2417_v46, %v1648_v10  ;;  %v1626_v62 = vadd.f32 -0.28449672, %v1614_v12 }
 0x206   : > { %2265 = vmatprep.mubr.f32.mxu1 %v1767_v42 }
 0x207   : > { %v1720_v32 = vmul.f32 %v2425_v61, %v1660_v20  ;;  %v1638_v0 = vmul.f32 %v2421_v27, %v1626_v62 }
 0x209   : > { %v1732_v60 = vsub.f32 1.0, %v1720_v32  ;;  %v1650_v17 = vadd.f32 0.2548296, %v1638_v0 }
 0x20b   : > { %v1744_v39 = vmul.f32 %v1732_v60, %v1504_v33  ;;  %v1662_v41 = vmul.f32 %v2421_v27, %v1650_v17 }
 0x20d   : > { %v1756_v46 = vadd.f32 1.0, %v1744_v39  ;;  %v1722_v45 = vmul.f32 %v2427_v57, %v1662_v41 }
 0x20f   : > { %v1768_v40 = vmul.f32 %v1756_v46, %v1468_v38  ;;  %v1734_v23 = vsub.f32 1.0, %v1722_v45 }
 0x211   : > { %2266 = vmatmul.mubr.f32.gmra.mxu1 %v1768_v40  ;;  %v1746_v6 = vmul.f32 %v1734_v23, %v1506_v59 }
 0x212   : > { %2268 = vmatprep.mubr.f32.mxu1 %v1769_v14 }
 0x213   : > { %v1758_v1 = vadd.f32 1.0, %v1746_v6 }
 0x215   : > { %v1770_v4 = vmul.f32 %v1758_v1, %v1470_v19 }
 0x217   : > { %2269 = vmatmul.mubr.f32.gmra.mxu1 %v1770_v4 }
 0x26f   : > { %v2255_v21 = vpop.f32.mrf.mxu1 }
 0x270   : > { %v1866_v2 = vadd.f32 %v2255_v21, %v2109_v22 }
 0x271   : > { %v1860_v26 = vpop.f32.mrf.mxu1 }
 0x272   : > { %1920 = vst [vmem:[%s4383_s16 + $0x8] sm:$0xff] %v1866_v2  ;;  %v1861_v9 = vadd.f32 %v2109_v22, %v1860_v26 }
 0x274   : > { %1919 = vst [vmem:[%s4383_s16] sm:$0xff] %v1861_v9 }
 0x286   : > { %v2258_v8 = vpop.f32.mrf.mxu1 }
 0x287   : > { %v1876_v54 = vadd.f32 %v2258_v8, %v2109_v22 }
 0x288   : > { %v1870_v50 = vpop.f32.mrf.mxu1 }
 0x289   : > { %1922 = vst [vmem:[%s4383_s16 + $0x18] sm:$0xff] %v1876_v54  ;;  %v1871_v31 = vadd.f32 %v2109_v22, %v1870_v50 }
 0x28b   : > { %1921 = vst [vmem:[%s4383_s16 + $0x10] sm:$0xff] %v1871_v31 }
 0x29f   : > { %v2261_v44 = vpop.f32.mrf.mxu1 }
 0x2a0   : > { %v1886_v51 = vadd.f32 %v2261_v44, %v2109_v22 }
 0x2a1   : > { %v1880_v5 = vpop.f32.mrf.mxu1 }
 0x2a2   : > { %1924 = vst [vmem:[%s4383_s16 + $0x28] sm:$0xff] %v1886_v51  ;;  %v1881_v35 = vadd.f32 %v2109_v22, %v1880_v5 }
 0x2a4   : > { %1923 = vst [vmem:[%s4383_s16 + $0x20] sm:$0xff] %v1881_v35 }
 0x2bd   : > { %v2264_v49 = vpop.f32.mrf.mxu1 }
 0x2be   : > { %v1896_v27 = vadd.f32 %v2264_v49, %v2109_v22 }
 0x2bf   : > { %v1890_v55 = vpop.f32.mrf.mxu1 }
 0x2c0   : > { %1926 = vst [vmem:[%s4383_s16 + $0x38] sm:$0xff] %v1896_v27  ;;  %v1891_v16 = vadd.f32 %v2109_v22, %v1890_v55 }
 0x2c2   : > { %1925 = vst [vmem:[%s4383_s16 + $0x30] sm:$0xff] %v1891_v16 }
 0x2d1   : > { %v2267_v28 = vpop.f32.mrf.mxu1 }
 0x2d2   : > { %v1906_v48 = vadd.f32 %v2267_v28, %v2109_v22 }
 0x2d3   : > { %v1900_v63 = vpop.f32.mrf.mxu1 }
 0x2d4   : > { %1928 = vst [vmem:[%s4383_s16 + $0x48] sm:$0xff] %v1906_v48  ;;  %v1901_v13 = vadd.f32 %v2109_v22, %v1900_v63 }
 0x2d6   : > { %1927 = vst [vmem:[%s4383_s16 + $0x40] sm:$0xff] %v1901_v13 }
 0x2d7   : > { %v2270_v15 = vpop.f32.mrf.mxu1 }
 0x2d8   : > { %v1916_v29 = vadd.f32 %v2270_v15, %v2109_v22 }
 0x2d9   : > { %v1910_v37 = vpop.f32.mrf.mxu1 }
 0x2da   : > { %1930 = vst [vmem:[%s4383_s16 + $0x58] sm:$0xff] %v1916_v29  ;;  %v1911_v18 = vadd.f32 %v2109_v22, %v1910_v37 }
 0x2dc   : > { %1929 = vst [vmem:[%s4383_s16 + $0x50] sm:$0xff] %v1911_v18 }
 0x2dd   : > { %2550 = shalt.err (!%p2547_p10)
}
 0x2de   : > { %s2551_s11 = scalar_lea.hbm %s4400_s22, 1536  ;;  %s2555_s21 = scalar_lea.hbm %s4454_s7, 3072 }
 0x2df   : > { %p2552_p6 = scmp.ne.s32.totalorder %s4400_s22, %s2551_s11  ;;  %p2556_p3 = scmp.lt.s32.totalorder %s4400_s22, %s4454_s7 }
 0x2e0   : > { %p2557_p11 = scmp.lt.s32.totalorder %s2555_s21, %s2551_s11 }
 0x2e1   : > { %p2553_p4 = pnand %p2552_p6, %p4705_p1 }
 0x2e2   : > { %p2558_p5 = por %p2557_p11, %p2556_p3 }
 0x2e3   : > { %p2554_p8 = pneg %p2553_p4 }
 0x2e5   : > { %p2559_p7 = pnand %p2558_p5, %p2554_p8 }
 0x2e7   : > { %2562 = shalt.err (!%p2559_p7)
}
 0x2e8   : > { %s2620_s1 = smov 128   ;;  %s2621_s18 = smov 8  }
 0x2e9   : > { %2311 = dma.vmem_to_hbm [thread:$0]  (%p4705_p1), %s4403_s19, 1536, %s4400_s22, %s1932_s10, %s2620_s1, %s2620_s1, %s2621_s18  }
 0x2ea PF: > { %s1960_s23 = sand.u32 1, %s2597_s24   ;;  %p4706_p12 = scmp.ne.s32.totalorder %s4498_s8, 0 }
 0x2eb   : > { %p4707_p9 = scmp.ge.s32.totalorder %s2609_s27, 2  ;;  %s1961_s28 = scalar_lea.sflag [#allocation5], %s1960_s23 }
 0x2ed   : > { %p2328_p13 = pnand %p4707_p9, %p4706_p12 }
 0x2ef   : > { %p2329_p0 = pneg %p2328_p13 }
 0x2f1   : > { %2592 = dma.done.wait (%p2329_p0), %s1961_s28, 1536  }
 0x2f2   : > { %2594 = vsyncadd (%p2329_p0), %s1961_s28, 4294965760  ;;  %p22_p2 = scmp.ge.s32.totalorder %s2751_s14, 4   ;;  %s4708_s24 = smov %s2601_s25 }
 0x2f3   : > { %s4709_s25 = smov %s2605_s26  ;;  %s4710_s26 = smov %s2761_s17 }
 0x2f4   : > { %s4711_s27 = smov %s2751_s14  ;;  %24 = sbr.rel (!%p22_p2) target bundleno = 9 (0x9), region = 105 }
 0x2f9   :  { %1966 = vsyncpa [#allocation4], 1 }
 0x2fa   :  { %1968 = vsyncpa [#allocation4 + $0x1], 1 }
 0x2fb   :  { %1969 = vsyncpa [#allocation7], 1 }
 0x2fc   :  { %1970 = vsyncpa [#allocation10], 1 }
 0x2fd   :  { %1971 = vsyncpa [#allocation5], 1 }
 0x2fe   :  { %1973 = vsyncpa [#allocation5 + $0x1], 1 }

</bundles_post_ra>
